<compile_context>
chip_gen: v7x
topology: tpu7x:2x2x1
jax: 0.10.0
libtpu: 0.0.40
codegen_flags: <defaults>
</compile_context>

<pallas_src>
import jax
import jax.numpy as jnp
from jax import lax
from jax.experimental import pallas as pl
from jax.experimental.pallas import tpu as pltpu

FP_SIZE = 128      # fingerprint_size   (PCA n_components=128)
IMG_SIZE = 256     # image_feature_size (PCA n_components=256)
NUM_HEADS = 4
BN_EPS = 1e-5
OUT_ROWS = 8       # output rows per tile (sublane-aligned lane-dense writeback)


def _round_up(x, m):
    return ((x + m - 1) // m) * m


# --------------------------------- kernel ------------------------------------

def mixed_input_kernel(
    fp_ref, img_ref,
    w_fp_ref, b_fp_ref,
    w_img_ref, b_img_ref,
    w_fc1a_ref, w_fc1b_ref, b_fc1_ref,
    w_fc2_ref, b_fc2_ref,
    w_fc3_ref, b_fc3_ref,
    out_ref,
):
    f32 = jnp.float32
    cdt = w_fp_ref.dtype  # MXU operand dtype (bf16 by default); elementwise stays f32

    fp = fp_ref[...].astype(cdt)
    img = img_ref[...].astype(cdt)

    # fingerprint branch: Linear -> ReLU   (BN folded forward, Dropout eval = id)
    r1 = jnp.dot(fp, w_fp_ref[...], preferred_element_type=f32) + b_fp_ref[...]
    r1 = jnp.maximum(r1, 0.0)

    # image branch: Linear -> ReLU
    r2 = jnp.dot(img, w_img_ref[...], preferred_element_type=f32) + b_img_ref[...]
    r2 = jnp.maximum(r2, 0.0)

    # Attention fusion is an exact identity (fused == [bn1(r1), bn2(r2)]); both BNs are
    # folded into the two 256-row halves of w_fc1, the concat becomes two matmuls.
    h = (jnp.dot(r1.astype(cdt), w_fc1a_ref[...], preferred_element_type=f32)
         + jnp.dot(r2.astype(cdt), w_fc1b_ref[...], preferred_element_type=f32)
         + b_fc1_ref[...])
    h = jnp.maximum(h, 0.0)

    # fc2 (BN_fc folded in) -> ReLU
    h = jnp.dot(h.astype(cdt), w_fc2_ref[...], preferred_element_type=f32) + b_fc2_ref[...]
    h = jnp.maximum(h, 0.0)

    # final 128 -> 1 projection, emitted lane-dense: (8,128) @ (TB,128)^T -> (8, TB).
    # All 8 output rows are identical replicas; wrapper keeps row 0.
    y = lax.dot_general(
        w_fc3_ref[...], h.astype(cdt),
        dimension_numbers=(((1,), (1,)), ((), ())),
        preferred_element_type=f32,
    ) + b_fc3_ref[...]
    out_ref[...] = y.astype(out_ref.dtype)


# ----------------------------- param preparation -------------------------------

def prepare_params(p, compute_dtype=jnp.bfloat16):
    """One-time (per model) folding: eval BatchNorms into the following Linear, attention
    identity elimination (att_* unused), lane-dense fc3, dtype casts. Call once and reuse."""
    def bn_affine(g, be, rm, rv):
        a = g / jnp.sqrt(rv + BN_EPS)      # (1, N)
        c = be - a * rm                    # (1, N)
        return a, c

    a1, c1 = bn_affine(p["g_fp"], p["be_fp"], p["rm_fp"], p["rv_fp"])
    a2, c2 = bn_affine(p["g_img"], p["be_img"], p["rm_img"], p["rv_img"])
    a3, c3 = bn_affine(p["g_fc"], p["be_fc"], p["rm_fc"], p["rv_fc"])

    w_fc1 = p["w_fc1"]                     # (512, 256): rows 0..255 <- x1, 256..511 <- x2
    w_fc1a = a1[0][:, None] * w_fc1[:256]
    w_fc1b = a2[0][:, None] * w_fc1[256:]
    b_fc1 = p["b_fc1"] + c1 @ w_fc1[:256] + c2 @ w_fc1[256:]

    w_fc2 = a3[0][:, None] * p["w_fc2"]    # (256, 128)
    b_fc2 = p["b_fc2"] + c3 @ p["w_fc2"]

    # fc3 as (OUT_ROWS, 128) replicated rows, bias as (OUT_ROWS, 1)
    w_fc3 = jnp.broadcast_to(p["w_fc3"].T, (OUT_ROWS, 128)) + jnp.zeros((OUT_ROWS, 128))
    b_fc3 = jnp.broadcast_to(p["b_fc3"].reshape(1, 1), (OUT_ROWS, 1)) + jnp.zeros((OUT_ROWS, 1))

    cd = compute_dtype
    f32 = jnp.float32
    # NOTE: folding g/sqrt(rv+eps) into bf16 weights can amplify quantization error if
    # running_var is extremely small; pass compute_dtype=jnp.float32 in that case.
    return (
        p["w_fp"].astype(cd), p["b_fp"].astype(f32),
        p["w_img"].astype(cd), p["b_img"].astype(f32),
        w_fc1a.astype(cd), w_fc1b.astype(cd), b_fc1.astype(f32),
        w_fc2.astype(cd), b_fc2.astype(f32),
        w_fc3.astype(cd), b_fc3.astype(f32),
    )


# -------------------------------- wrapper -------------------------------------

def _pick_block_b(B):
    Bp = _round_up(max(B, 8), 8)
    if Bp <= 256:
        return Bp                                   # tiny problem: one tile
    # >=2 grid steps (v7x megacore), lane-dense (multiple of 128) tiles, cap at 2048
    return min(2048, _round_up((Bp + 1) // 2, 128))


def _vmem_limit_bytes(block_b, kparams):
    in_tiles = 2 * block_b * (FP_SIZE + IMG_SIZE) * 4          # double-buffered f32 inputs
    out_tiles = 2 * OUT_ROWS * block_b * 4                     # double-buffered output tiles
    weights = 2 * sum(int(w.size) * w.dtype.itemsize for w in kparams)
    temps = 6 * block_b * 256 * 4                              # live intermediates (r1,r2,h,...)
    return int(in_tiles + out_tiles + weights + temps) + (4 << 20)


def mixed_input_forward(fingerprint, image, prepared_params, *, block_b=None):
    """fingerprint: (B, 128) f32, image: (B, 256) f32  ->  (B, 1) float32.
    `prepared_params` comes from prepare_params() (call it once per model)."""
    B = fingerprint.shape[0]
    if block_b is None:
        block_b = _pick_block_b(B)
    num_blocks = pl.cdiv(B, block_b)
    assert block_b % 8 == 0 and (num_blocks == 1 or block_b % 128 == 0), block_b

    # Only the trivial single-block case pads rows; multi-block tails are handled by the
    # pipeline's partial boundary block (don't-care rows go through matmul/ReLU only).
    if B < block_b:
        pad = block_b - B
        fingerprint = jnp.pad(fingerprint, ((0, pad), (0, 0)))
        image = jnp.pad(image, ((0, pad), (0, 0)))

    kp = prepared_params
    n_out = num_blocks * block_b

    in_specs = [
        pl.BlockSpec((block_b, FP_SIZE), lambda i: (i, 0)),
        pl.BlockSpec((block_b, IMG_SIZE), lambda i: (i, 0)),
    ] + [pl.BlockSpec(w.shape, lambda i: (0, 0)) for w in kp]   # weights VMEM-resident
    out_spec = pl.BlockSpec((OUT_ROWS, block_b), lambda i: (0, i))

    macs_per_row = (FP_SIZE * 256 + IMG_SIZE * 256 + 256 * 256 + 256 * 256
                    + 256 * 128 + 128 * OUT_ROWS)
    cost = pl.CostEstimate(
        flops=2 * B * macs_per_row,
        transcendentals=0,
        bytes_accessed=int(fingerprint.size) * 4 + int(image.size) * 4
        + OUT_ROWS * n_out * 4
        + sum(int(w.size) * w.dtype.itemsize for w in kp),
    )

    out = pl.pallas_call(
        mixed_input_kernel,
        out_shape=jax.ShapeDtypeStruct((OUT_ROWS, n_out), jnp.float32),
        grid_spec=pltpu.PrefetchScalarGridSpec(
            num_scalar_prefetch=0,
            grid=(num_blocks,),
            in_specs=in_specs,
            out_specs=out_spec,
        ),
        compiler_params=pltpu.CompilerParams(
            dimension_semantics=("parallel",),
            vmem_limit_bytes=_vmem_limit_bytes(block_b, kp),
        ),
        cost_estimate=cost,
    )(fingerprint, image, *kp)
    return out[0, :B].reshape(B, 1)


# ----------------------------- parameter init ---------------------------------

def _linear_init(key, fan_in, fan_out):
    """PyTorch-style U(-1/sqrt(fan_in), 1/sqrt(fan_in)); weight stored as (in, out)."""
    kw, kb = jax.random.split(key)
    bound = 1.0 / jnp.sqrt(float(fan_in))
    w = jax.random.uniform(kw, (fan_in, fan_out), jnp.float32, -bound, bound)
    b = jax.random.uniform(kb, (1, fan_out), jnp.float32, -bound, bound)
    return w, b


def make_params(key):
    ks = iter(jax.random.split(key, 32))
    p = {}

    def bn_params(n):
        g = 1.0 + 0.05 * jax.random.normal(next(ks), (1, n), jnp.float32)
        be = 0.05 * jax.random.normal(next(ks), (1, n), jnp.float32)
        rm = 0.1 * jax.random.normal(next(ks), (1, n), jnp.float32)
        rv = 1.0 + 0.1 * jax.random.uniform(next(ks), (1, n), jnp.float32)
        return g, be, rm, rv

    p["w_fp"], p["b_fp"] = _linear_init(next(ks), FP_SIZE, 256)
    p["g_fp"], p["be_fp"], p["rm_fp"], p["rv_fp"] = bn_params(256)

    p["w_img"], p["b_img"] = _linear_init(next(ks), IMG_SIZE, 256)
    p["g_img"], p["be_img"], p["rm_img"], p["rv_img"] = bn_params(256)

    # Attention heads (kept for reference fidelity; provably do not affect the output).
    att_w1, att_b1, att_w2, att_b2 = [], [], [], []
    for _ in range(NUM_HEADS):
        w1, b1 = _linear_init(next(ks), 512, 128)
        w2, b2 = _linear_init(next(ks), 128, 1)
        att_w1.append(w1); att_b1.append(b1); att_w2.append(w2); att_b2.append(b2)
    p["att_w1"], p["att_b1"], p["att_w2"], p["att_b2"] = att_w1, att_b1, att_w2, att_b2

    p["w_fc1"], p["b_fc1"] = _linear_init(next(ks), 512, 256)
    p["g_fc"], p["be_fc"], p["rm_fc"], p["rv_fc"] = bn_params(256)
    p["w_fc2"], p["b_fc2"] = _linear_init(next(ks), 256, 128)
    p["w_fc3"], p["b_fc3"] = _linear_init(next(ks), 128, 1)
    return p


# -------------------------------- reference -----------------------------------

def reference_forward(fp, img, p):
    """Literal (unoptimized) translation of the PyTorch module, eval mode."""
    def bn(x, g, be, rm, rv):
        return g * (x - rm) / jnp.sqrt(rv + BN_EPS) + be

    x1 = bn(jnp.maximum(fp @ p["w_fp"] + p["b_fp"], 0.0),
            p["g_fp"], p["be_fp"], p["rm_fp"], p["rv_fp"])
    x2 = bn(jnp.maximum(img @ p["w_img"] + p["b_img"], 0.0),
            p["g_img"], p["be_img"], p["rm_img"], p["rv_img"])
    combined = jnp.concatenate([x1, x2], axis=1)
    scores = jnp.concatenate(
        [jnp.tanh(combined @ w1 + b1) @ w2 + b2
         for w1, b1, w2, b2 in zip(p["att_w1"], p["att_b1"], p["att_w2"], p["att_b2"])],
        axis=1)                                             # (B, 4)
    attn = jax.nn.softmax(scores, axis=1)
    fused = jnp.sum(attn[:, :, None] * combined[:, None, :], axis=1)
    y = bn(jnp.maximum(fused @ p["w_fc1"] + p["b_fc1"], 0.0),
           p["g_fc"], p["be_fc"], p["rm_fc"], p["rv_fc"])
    y = jnp.maximum(y @ p["w_fc2"] + p["b_fc2"], 0.0)
    return y @ p["w_fc3"] + p["b_fc3"]


# ---------------------------------- main ---------------------------------------

if __name__ == "__main__":
    key = jax.random.PRNGKey(0)
    k_fp, k_img, k_p = jax.random.split(key, 3)
    params = make_params(k_p)

    # Case 1: mid-size batch, not a multiple of 8 -> multi-step grid + partial tail block
    B1 = 300
    fp1 = jax.random.normal(k_fp, (B1, FP_SIZE), jnp.float32)
    im1 = jax.random.normal(k_img, (B1, IMG_SIZE), jnp.float32)
    # Case 2: tiny batch -> single row-padded tile
    B2 = 28
    fp2, im2 = fp1[:B2], im1[:B2]

    with jax.default_matmul_precision("highest"):
        ref1 = reference_forward(fp1, im1, params)
        ref2 = ref1[:B2]

    # One-time parameter folding (hoisted out of the per-forward path).
    prep32 = prepare_params(params, compute_dtype=jnp.float32)
    prep16 = prepare_params(params, compute_dtype=jnp.bfloat16)

    # f32 kernel, single tile (exactness check).
    out2_32 = jax.block_until_ready(mixed_input_forward(fp2, im2, prep32))
    assert out2_32.shape == (B2, 1), out2_32.shape
    assert jnp.allclose(out2_32, ref2, atol=1e-2, rtol=1e-2), \
        float(jnp.max(jnp.abs(out2_32 - ref2)))

    # bf16 kernel, default tiling: 2 grid steps (256-row blocks), partial tail, no pad.
    out1_def = jax.block_until_ready(mixed_input_forward(fp1, im1, prep16))
    assert out1_def.shape == (B1, 1), out1_def.shape
    assert jnp.allclose(out1_def, ref1, atol=5e-2, rtol=5e-2), \
        float(jnp.max(jnp.abs(out1_def - ref1)))

    # bf16 kernel, explicit 128-row blocks: 3 grid steps (exercises block indexing).
    out1_128 = jax.block_until_ready(mixed_input_forward(fp1, im1, prep16, block_b=128))
    assert out1_128.shape == (B1, 1), out1_128.shape
    assert jnp.allclose(out1_128, ref1, atol=5e-2, rtol=5e-2), \
        float(jnp.max(jnp.abs(out1_128 - ref1)))

    print("KERNEL_OK")
</pallas_src>

<mosaic_0001>
module attributes {stable_mosaic.version = 11 : i64} {
  func.func @mixed_input_kernel(%arg0: i32, %arg1: memref<32x128xf32, #tpu.memory_space<vmem>>, %arg2: memref<32x256xf32, #tpu.memory_space<vmem>>, %arg3: memref<128x256xf32, #tpu.memory_space<vmem>>, %arg4: memref<1x256xf32, #tpu.memory_space<vmem>>, %arg5: memref<256x256xf32, #tpu.memory_space<vmem>>, %arg6: memref<1x256xf32, #tpu.memory_space<vmem>>, %arg7: memref<256x256xf32, #tpu.memory_space<vmem>>, %arg8: memref<256x256xf32, #tpu.memory_space<vmem>>, %arg9: memref<1x256xf32, #tpu.memory_space<vmem>>, %arg10: memref<256x128xf32, #tpu.memory_space<vmem>>, %arg11: memref<1x128xf32, #tpu.memory_space<vmem>>, %arg12: memref<8x128xf32, #tpu.memory_space<vmem>>, %arg13: memref<8x1xf32, #tpu.memory_space<vmem>>, %arg14: memref<8x32xf32, #tpu.memory_space<vmem>>) attributes {dimension_semantics = [#tpu.dimension_semantics<parallel>], iteration_bounds = array<i64: 1>, scalar_prefetch = 0 : i64, scratch_operands = 0 : i64, tpu.core_type = #tpu.core_type<tc>, window_params = [{transform_indices = @transform_0, window_bounds = array<i64: 32, 128>}, {transform_indices = @transform_1, window_bounds = array<i64: 32, 256>}, {pipeline_mode = #tpu.pipeline_mode<synchronous>, transform_indices = @transform_2, window_bounds = array<i64: 128, 256>}, {pipeline_mode = #tpu.pipeline_mode<synchronous>, transform_indices = @transform_3, window_bounds = array<i64: 1, 256>}, {pipeline_mode = #tpu.pipeline_mode<synchronous>, transform_indices = @transform_4, window_bounds = array<i64: 256, 256>}, {pipeline_mode = #tpu.pipeline_mode<synchronous>, transform_indices = @transform_5, window_bounds = array<i64: 1, 256>}, {pipeline_mode = #tpu.pipeline_mode<synchronous>, transform_indices = @transform_6, window_bounds = array<i64: 256, 256>}, {pipeline_mode = #tpu.pipeline_mode<synchronous>, transform_indices = @transform_7, window_bounds = array<i64: 256, 256>}, {pipeline_mode = #tpu.pipeline_mode<synchronous>, transform_indices = @transform_8, window_bounds = array<i64: 1, 256>}, {pipeline_mode = #tpu.pipeline_mode<synchronous>, transform_indices = @transform_9, window_bounds = array<i64: 256, 128>}, {pipeline_mode = #tpu.pipeline_mode<synchronous>, transform_indices = @transform_10, window_bounds = array<i64: 1, 128>}, {pipeline_mode = #tpu.pipeline_mode<synchronous>, transform_indices = @transform_11, window_bounds = array<i64: 8, 128>}, {pipeline_mode = #tpu.pipeline_mode<synchronous>, transform_indices = @transform_12, window_bounds = array<i64: 8, 1>}, {transform_indices = @transform_13, window_bounds = array<i64: 8, 32>}]} {
    %c0 = arith.constant 0 : index
    %c0_0 = arith.constant 0 : index
    %0 = vector.load %arg1[%c0, %c0_0] : memref<32x128xf32, #tpu.memory_space<vmem>>, vector<32x128xf32>
    %c0_1 = arith.constant 0 : index
    %c0_2 = arith.constant 0 : index
    %1 = vector.load %arg2[%c0_1, %c0_2] : memref<32x256xf32, #tpu.memory_space<vmem>>, vector<32x256xf32>
    %c0_3 = arith.constant 0 : index
    %c0_4 = arith.constant 0 : index
    %2 = vector.load %arg3[%c0_3, %c0_4] : memref<128x256xf32, #tpu.memory_space<vmem>>, vector<128x256xf32>
    %cst = arith.constant dense<0.000000e+00> : vector<32x256xf32>
    %3 = tpu.matmul %0, %2, %cst {dimension_numbers = #tpu.dot_dimension_numbers<[1], [0], [0], [1], [0, 0, 1, 1], [], []>} : vector<32x128xf32>, vector<128x256xf32>, vector<32x256xf32> -> vector<32x256xf32>
    %c0_5 = arith.constant 0 : index
    %c0_6 = arith.constant 0 : index
    %4 = vector.load %arg4[%c0_5, %c0_6] : memref<1x256xf32, #tpu.memory_space<vmem>>, vector<1x256xf32>
    %5 = vector.broadcast %4 : vector<1x256xf32> to vector<32x256xf32>
    %6 = arith.addf %3, %5 : vector<32x256xf32>
    %cst_7 = arith.constant 0.000000e+00 : f32
    %7 = vector.broadcast %cst_7 : f32 to vector<32x256xf32>
    %8 = arith.maximumf %6, %7 : vector<32x256xf32>
    %c0_8 = arith.constant 0 : index
    %c0_9 = arith.constant 0 : index
    %9 = vector.load %arg5[%c0_8, %c0_9] : memref<256x256xf32, #tpu.memory_space<vmem>>, vector<256x256xf32>
    %cst_10 = arith.constant dense<0.000000e+00> : vector<32x256xf32>
    %10 = tpu.matmul %1, %9, %cst_10 {dimension_numbers = #tpu.dot_dimension_numbers<[1], [0], [0], [1], [0, 0, 1, 1], [], []>} : vector<32x256xf32>, vector<256x256xf32>, vector<32x256xf32> -> vector<32x256xf32>
    %c0_11 = arith.constant 0 : index
    %c0_12 = arith.constant 0 : index
    %11 = vector.load %arg6[%c0_11, %c0_12] : memref<1x256xf32, #tpu.memory_space<vmem>>, vector<1x256xf32>
    %12 = vector.broadcast %11 : vector<1x256xf32> to vector<32x256xf32>
    %13 = arith.addf %10, %12 : vector<32x256xf32>
    %cst_13 = arith.constant 0.000000e+00 : f32
    %14 = vector.broadcast %cst_13 : f32 to vector<32x256xf32>
    %15 = arith.maximumf %13, %14 : vector<32x256xf32>
    %c0_14 = arith.constant 0 : index
    %c0_15 = arith.constant 0 : index
    %16 = vector.load %arg7[%c0_14, %c0_15] : memref<256x256xf32, #tpu.memory_space<vmem>>, vector<256x256xf32>
    %cst_16 = arith.constant dense<0.000000e+00> : vector<32x256xf32>
    %17 = tpu.matmul %8, %16, %cst_16 {dimension_numbers = #tpu.dot_dimension_numbers<[1], [0], [0], [1], [0, 0, 1, 1], [], []>} : vector<32x256xf32>, vector<256x256xf32>, vector<32x256xf32> -> vector<32x256xf32>
    %c0_17 = arith.constant 0 : index
    %c0_18 = arith.constant 0 : index
    %18 = vector.load %arg8[%c0_17, %c0_18] : memref<256x256xf32, #tpu.memory_space<vmem>>, vector<256x256xf32>
    %cst_19 = arith.constant dense<0.000000e+00> : vector<32x256xf32>
    %19 = tpu.matmul %15, %18, %cst_19 {dimension_numbers = #tpu.dot_dimension_numbers<[1], [0], [0], [1], [0, 0, 1, 1], [], []>} : vector<32x256xf32>, vector<256x256xf32>, vector<32x256xf32> -> vector<32x256xf32>
    %20 = arith.addf %17, %19 : vector<32x256xf32>
    %c0_20 = arith.constant 0 : index
    %c0_21 = arith.constant 0 : index
    %21 = vector.load %arg9[%c0_20, %c0_21] : memref<1x256xf32, #tpu.memory_space<vmem>>, vector<1x256xf32>
    %22 = vector.broadcast %21 : vector<1x256xf32> to vector<32x256xf32>
    %23 = arith.addf %20, %22 : vector<32x256xf32>
    %cst_22 = arith.constant 0.000000e+00 : f32
    %24 = vector.broadcast %cst_22 : f32 to vector<32x256xf32>
    %25 = arith.maximumf %23, %24 : vector<32x256xf32>
    %c0_23 = arith.constant 0 : index
    %c0_24 = arith.constant 0 : index
    %26 = vector.load %arg10[%c0_23, %c0_24] : memref<256x128xf32, #tpu.memory_space<vmem>>, vector<256x128xf32>
    %cst_25 = arith.constant dense<0.000000e+00> : vector<32x128xf32>
    %27 = tpu.matmul %25, %26, %cst_25 {dimension_numbers = #tpu.dot_dimension_numbers<[1], [0], [0], [1], [0, 0, 1, 1], [], []>} : vector<32x256xf32>, vector<256x128xf32>, vector<32x128xf32> -> vector<32x128xf32>
    %c0_26 = arith.constant 0 : index
    %c0_27 = arith.constant 0 : index
    %28 = vector.load %arg11[%c0_26, %c0_27] : memref<1x128xf32, #tpu.memory_space<vmem>>, vector<1x128xf32>
    %29 = vector.broadcast %28 : vector<1x128xf32> to vector<32x128xf32>
    %30 = arith.addf %27, %29 : vector<32x128xf32>
    %cst_28 = arith.constant 0.000000e+00 : f32
    %31 = vector.broadcast %cst_28 : f32 to vector<32x128xf32>
    %32 = arith.maximumf %30, %31 : vector<32x128xf32>
    %c0_29 = arith.constant 0 : index
    %c0_30 = arith.constant 0 : index
    %33 = vector.load %arg12[%c0_29, %c0_30] : memref<8x128xf32, #tpu.memory_space<vmem>>, vector<8x128xf32>
    %cst_31 = arith.constant dense<0.000000e+00> : vector<8x32xf32>
    %34 = tpu.matmul %33, %32, %cst_31 {dimension_numbers = #tpu.dot_dimension_numbers<[1], [1], [0], [0], [0, 0, 1, 0], [], []>} : vector<8x128xf32>, vector<32x128xf32>, vector<8x32xf32> -> vector<8x32xf32>
    %c0_32 = arith.constant 0 : index
    %c0_33 = arith.constant 0 : index
    %35 = vector.load %arg13[%c0_32, %c0_33] : memref<8x1xf32, #tpu.memory_space<vmem>>, vector<8x1xf32>
    %36 = vector.broadcast %35 : vector<8x1xf32> to vector<8x32xf32>
    %37 = arith.addf %34, %36 : vector<8x32xf32>
    %c0_34 = arith.constant 0 : index
    %c0_35 = arith.constant 0 : index
    %38 = vector.load %arg14[%c0_34, %c0_35] : memref<8x32xf32, #tpu.memory_space<vmem>>, vector<8x32xf32>
    tpu.vector_store %arg14[%c0_34, %c0_35], %37 {strides = array<i32>} : memref<8x32xf32, #tpu.memory_space<vmem>>, vector<8x32xf32>,
    return
  }
  func.func @transform_0(%arg0: i32) -> (i32, i32) {
    %c0_i32 = arith.constant 0 : i32
    %c0_i32_0 = arith.constant 0 : i32
    return %arg0, %c0_i32 : i32, i32
  }
  func.func @transform_1(%arg0: i32) -> (i32, i32) {
    %c0_i32 = arith.constant 0 : i32
    %c0_i32_0 = arith.constant 0 : i32
    return %arg0, %c0_i32 : i32, i32
  }
  func.func @transform_2(%arg0: i32) -> (i32, i32) {
    %c0_i32 = arith.constant 0 : i32
    %c0_i32_0 = arith.constant 0 : i32
    %c0_i32_1 = arith.constant 0 : i32
    return %c0_i32, %c0_i32_0 : i32, i32
  }
  func.func @transform_3(%arg0: i32) -> (i32, i32) {
    %c0_i32 = arith.constant 0 : i32
    %c0_i32_0 = arith.constant 0 : i32
    %c0_i32_1 = arith.constant 0 : i32
    return %c0_i32, %c0_i32_0 : i32, i32
  }
  func.func @transform_4(%arg0: i32) -> (i32, i32) {
    %c0_i32 = arith.constant 0 : i32
    %c0_i32_0 = arith.constant 0 : i32
    %c0_i32_1 = arith.constant 0 : i32
    return %c0_i32, %c0_i32_0 : i32, i32
  }
  func.func @transform_5(%arg0: i32) -> (i32, i32) {
    %c0_i32 = arith.constant 0 : i32
    %c0_i32_0 = arith.constant 0 : i32
    %c0_i32_1 = arith.constant 0 : i32
    return %c0_i32, %c0_i32_0 : i32, i32
  }
  func.func @transform_6(%arg0: i32) -> (i32, i32) {
    %c0_i32 = arith.constant 0 : i32
    %c0_i32_0 = arith.constant 0 : i32
    %c0_i32_1 = arith.constant 0 : i32
    return %c0_i32, %c0_i32_0 : i32, i32
  }
  func.func @transform_7(%arg0: i32) -> (i32, i32) {
    %c0_i32 = arith.constant 0 : i32
    %c0_i32_0 = arith.constant 0 : i32
    %c0_i32_1 = arith.constant 0 : i32
    return %c0_i32, %c0_i32_0 : i32, i32
  }
  func.func @transform_8(%arg0: i32) -> (i32, i32) {
    %c0_i32 = arith.constant 0 : i32
    %c0_i32_0 = arith.constant 0 : i32
    %c0_i32_1 = arith.constant 0 : i32
    return %c0_i32, %c0_i32_0 : i32, i32
  }
  func.func @transform_9(%arg0: i32) -> (i32, i32) {
    %c0_i32 = arith.constant 0 : i32
    %c0_i32_0 = arith.constant 0 : i32
    %c0_i32_1 = arith.constant 0 : i32
    return %c0_i32, %c0_i32_0 : i32, i32
  }
  func.func @transform_10(%arg0: i32) -> (i32, i32) {
    %c0_i32 = arith.constant 0 : i32
    %c0_i32_0 = arith.constant 0 : i32
    %c0_i32_1 = arith.constant 0 : i32
    return %c0_i32, %c0_i32_0 : i32, i32
  }
  func.func @transform_11(%arg0: i32) -> (i32, i32) {
    %c0_i32 = arith.constant 0 : i32
    %c0_i32_0 = arith.constant 0 : i32
    %c0_i32_1 = arith.constant 0 : i32
    return %c0_i32, %c0_i32_0 : i32, i32
  }
  func.func @transform_12(%arg0: i32) -> (i32, i32) {
    %c0_i32 = arith.constant 0 : i32
    %c0_i32_0 = arith.constant 0 : i32
    %c0_i32_1 = arith.constant 0 : i32
    return %c0_i32, %c0_i32_0 : i32, i32
  }
  func.func @transform_13(%arg0: i32) -> (i32, i32) {
    %c0_i32 = arith.constant 0 : i32
    %c0_i32_0 = arith.constant 0 : i32
    return %c0_i32, %arg0 : i32, i32
  }
}

</mosaic_0001>

<bundles_post_ra>
// kernel: tpu_custom_call.1
= control target key start
LH: loop header
LB: loop body
LE: loop exit
PB: predicated region body
PF: predicated region fallthrough
CT: control target
= control target key end

     0   :  { %18 = vsyncpa [#allocation3], 0  ;;  %s1836_s0 = inlined_call_operand.hbm [shape: f32[32,128], index: 0, kind: input, shape index: {}]   ;;  %s1837_s1 = inlined_call_operand.hbm [shape: f32[32,256], index: 1, kind: input, shape index: {}]   ;;  %s1838_s2 = inlined_call_operand.hbm [shape: f32[128,256], index: 2, kind: input, shape index: {}]   ;;  %s1839_s3 = inlined_call_operand.vmem [shape: f32[1,256], index: 3, kind: input, shape index: {}]   ;;  %s1840_s4 = inlined_call_operand.hbm [shape: f32[256,256], index: 4, kind: input, shape index: {}]   ;;  %s1841_s5 = inlined_call_operand.vmem [shape: f32[1,256], index: 5, kind: input, shape index: {}]   ;;  %s1842_s6 = inlined_call_operand.hbm [shape: f32[256,256], index: 6, kind: input, shape index: {}]   ;;  %s1843_s7 = inlined_call_operand.hbm [shape: f32[256,256], index: 7, kind: input, shape index: {}]   ;;  %s1844_s8 = inlined_call_operand.vmem [shape: f32[1,256], index: 8, kind: input, shape index: {}]   ;;  %s1845_s9 = inlined_call_operand.hbm [shape: f32[256,128], index: 9, kind: input, shape index: {}]   ;;  %s1846_s10 = inlined_call_operand.vmem [shape: f32[1,128], index: 10, kind: input, shape index: {}]   ;;  %s1847_s11 = inlined_call_operand.vmem [shape: f32[8,128], index: 11, kind: input, shape index: {}]   ;;  %s1848_s12 = inlined_call_operand.vmem [shape: f32[8,1], index: 12, kind: input, shape index: {}]   ;;  %s1849_s13 = inlined_call_operand.hbm [shape: f32[8,32], index: 13, kind: output, shape index: {}]  }
   0x1   :  { %19 = vsyncpa [#allocation6], 0 }
   0x2   :  { %20 = vsyncpa [#allocation9], 0 }
   0x3   :  { %21 = vsyncpa [#allocation12], 0 }
   0x4   :  { %22 = vsyncpa [#allocation4], 0  ;;  %s1559_s25 = smov [#allocation5]   ;;  %s1373_s29 = scalar_lea.hbm %s1837_s1, 1024 }
   0x5   :  { %s40_s26 = sshll.u32 %s1559_s25, 4  ;;  %p1374_p0 = scmp.ne.s32.totalorder %s1837_s1, %s1373_s29  ;;  %s41_s26 = int_to_ptr.vmem [resolvable:$true] %s40_s26 }
   0x6   :  { %p1377_p1 = scmp.lt.u32.totalorder %s1373_s29, %s1837_s1 }
   0x8   :  { %p1379_p2 = pnand %p1377_p1, %p1374_p0 }
   0xa   :  { %1382 = shalt.err (!%p1379_p2)
}
   0xb   :  { %s1383_s17 = scalar_lea.vmem %s41_s26, 1024  ;;  %p1388_p4 = scmp.lt.s32.totalorder %s41_s26, %s41_s26 }
   0xc   :  { %p1384_p3 = scmp.ne.s32.totalorder %s41_s26, %s1383_s17  ;;  %p1389_p5 = scmp.lt.s32.totalorder %s1383_s17, %s1383_s17 }
   0xe   :  { %p1390_p6 = por %p1389_p5, %p1388_p4 }
  0x10   :  { %p1391_p7 = pnand %p1390_p6, %p1384_p3 }
  0x12   :  { %1394 = shalt.err (!%p1391_p7)
}
  0x13   :  { %s1560_s18 = smov 256   ;;  %s1561_s19 = smov 16  }
  0x14   :  { %46 = dma.hbm_to_vmem [thread:$0]  %s1837_s1, 1024, %s41_s26, [#allocation6], %s1560_s18, %s1560_s18, %s1561_s19  }
  0x15   :  { %s1562_s22 = smov [#allocation8]   ;;  %s1563_s24 = smov [#allocation11]  }
  0x16   :  { %s66_s23 = sshll.u32 %s1562_s22, 4  ;;  %s92_s25 = sshll.u32 %s1563_s24, 4  ;;  %s67_s23 = int_to_ptr.vmem [resolvable:$true] %s66_s23  ;;  %s93_s25 = int_to_ptr.vmem [resolvable:$true] %s92_s25 }
  0x17   :  { %s1395_s29 = scalar_lea.hbm %s1840_s4, 8192 }
  0x18   :  { %p1396_p8 = scmp.ne.s32.totalorder %s1840_s4, %s1395_s29  ;;  %p1399_p9 = scmp.lt.u32.totalorder %s1395_s29, %s1840_s4 }
  0x1a   :  { %p1401_p10 = pnand %p1399_p9, %p1396_p8 }
  0x1c   :  { %1404 = shalt.err (!%p1401_p10)
}
  0x1d   :  { %s1405_s1 = scalar_lea.vmem %s67_s23, 8192  ;;  %p1410_p12 = scmp.lt.s32.totalorder %s67_s23, %s67_s23 }
  0x1e   :  { %p1406_p11 = scmp.ne.s32.totalorder %s67_s23, %s1405_s1  ;;  %p1411_p13 = scmp.lt.s32.totalorder %s1405_s1, %s1405_s1 }
  0x20   :  { %p1412_p0 = por %p1411_p13, %p1410_p12 }
  0x22   :  { %p1413_p1 = pnand %p1412_p0, %p1406_p11 }
  0x24   :  { %1416 = shalt.err (!%p1413_p1)
}
  0x25   :  { %72 = dma.hbm_to_vmem [thread:$0]  %s1840_s4, 8192, %s67_s23, [#allocation9], %s1560_s18, %s1560_s18, %s1561_s19  }
  0x26   :  { %s1417_s22 = scalar_lea.hbm %s1843_s7, 8192 }
  0x27   :  { %p1418_p2 = scmp.ne.s32.totalorder %s1843_s7, %s1417_s22  ;;  %p1421_p3 = scmp.lt.u32.totalorder %s1417_s22, %s1843_s7 }
  0x29   :  { %p1423_p4 = pnand %p1421_p3, %p1418_p2 }
  0x2b   :  { %1426 = shalt.err (!%p1423_p4)
}
  0x2c   :  { %s1427_s30 = scalar_lea.vmem %s93_s25, 8192  ;;  %p1432_p6 = scmp.lt.s32.totalorder %s93_s25, %s93_s25 }
  0x2d   :  { %p1428_p5 = scmp.ne.s32.totalorder %s93_s25, %s1427_s30  ;;  %p1433_p7 = scmp.lt.s32.totalorder %s1427_s30, %s1427_s30 }
  0x2f   :  { %p1434_p8 = por %p1433_p7, %p1432_p6 }
  0x31   :  { %p1435_p9 = pnand %p1434_p8, %p1428_p5 }
  0x33   :  { %1438 = shalt.err (!%p1435_p9)
}
  0x34   :  { %98 = dma.hbm_to_vmem [thread:$0]  %s1843_s7, 8192, %s93_s25, [#allocation12], %s1560_s18, %s1560_s18, %s1561_s19  }
  0x35   :  { %s1564_s14 = smov [#allocation2]   ;;  %s1439_s26 = scalar_lea.hbm %s1836_s0, 512 }
  0x36   :  { %s28_s15 = sshll.u32 %s1564_s14, 4  ;;  %p1440_p10 = scmp.ne.s32.totalorder %s1836_s0, %s1439_s26  ;;  %s29_s15 = int_to_ptr.vmem [resolvable:$true] %s28_s15 }
  0x37   :  { %p1443_p11 = scmp.lt.u32.totalorder %s1439_s26, %s1836_s0 }
  0x39   :  { %p1445_p12 = pnand %p1443_p11, %p1440_p10 }
  0x3b   :  { %1448 = shalt.err (!%p1445_p12)
}
  0x3c   :  { %s1449_s24 = scalar_lea.vmem %s29_s15, 512  ;;  %p1454_p0 = scmp.lt.s32.totalorder %s29_s15, %s29_s15 }
  0x3d   :  { %p1450_p13 = scmp.ne.s32.totalorder %s29_s15, %s1449_s24  ;;  %p1455_p1 = scmp.lt.s32.totalorder %s1449_s24, %s1449_s24 }
  0x3f   :  { %p1456_p2 = por %p1455_p1, %p1454_p0 }
  0x41   :  { %p1457_p3 = pnand %p1456_p2, %p1450_p13 }
  0x43   :  { %1460 = shalt.err (!%p1457_p3)
}
  0x44   :  { %s1565_s7 = smov 128   ;;  %s1566_s25 = smov 8  }
  0x45   :  { %34 = dma.hbm_to_vmem [thread:$0]  %s1836_s0, 512, %s29_s15, [#allocation3], %s1565_s7, %s1565_s7, %s1566_s25  }
  0x46   :  { %s1567_s29 = smov [#allocation7]   ;;  %s1568_s4 = smov [#allocation10]  }
  0x47   :  { %s52_s30 = sshll.u32 %s1567_s29, 4  ;;  %s80_s23 = sshll.u32 %s1568_s4, 4  ;;  %s53_s30 = int_to_ptr.vmem [resolvable:$true] %s52_s30  ;;  %s1705_s23 = int_to_ptr.vmem [resolvable:$true] %s80_s23 }
  0x48   :  { %s1461_s1 = scalar_lea.hbm %s1838_s2, 4096 }
  0x49   :  { %p1462_p4 = scmp.ne.s32.totalorder %s1838_s2, %s1461_s1  ;;  %p1465_p5 = scmp.lt.u32.totalorder %s1461_s1, %s1838_s2 }
  0x4b   :  { %p1467_p6 = pnand %p1465_p5, %p1462_p4 }
  0x4d   :  { %1470 = shalt.err (!%p1467_p6)
}
  0x4e   :  { %s1471_s0 = scalar_lea.vmem %s53_s30, 4096  ;;  %p1476_p8 = scmp.lt.s32.totalorder %s53_s30, %s53_s30 }
  0x4f   :  { %p1472_p7 = scmp.ne.s32.totalorder %s53_s30, %s1471_s0  ;;  %p1477_p9 = scmp.lt.s32.totalorder %s1471_s0, %s1471_s0 }
  0x51   :  { %p1478_p10 = por %p1477_p9, %p1476_p8 }
  0x53   :  { %p1479_p11 = pnand %p1478_p10, %p1472_p7 }
  0x55   :  { %1482 = shalt.err (!%p1479_p11)
}
  0x56   :  { %58 = dma.hbm_to_vmem [thread:$0]  %s1838_s2, 4096, %s53_s30, [#allocation6], %s1560_s18, %s1560_s18, %s1561_s19  }
  0x57   :  { %s1483_s28 = scalar_lea.hbm %s1842_s6, 8192 }
  0x58   :  { %p1484_p12 = scmp.ne.s32.totalorder %s1842_s6, %s1483_s28  ;;  %p1487_p13 = scmp.lt.u32.totalorder %s1483_s28, %s1842_s6 }
  0x5a   :  { %p1489_p0 = pnand %p1487_p13, %p1484_p12 }
  0x5c   :  { %1492 = shalt.err (!%p1489_p0)
}
  0x5d   :  { %s1493_s1 = scalar_lea.vmem %s1705_s23, 8192  ;;  %p1498_p2 = scmp.lt.s32.totalorder %s1705_s23, %s1705_s23 }
  0x5e   :  { %p1494_p1 = scmp.ne.s32.totalorder %s1705_s23, %s1493_s1  ;;  %p1499_p3 = scmp.lt.s32.totalorder %s1493_s1, %s1493_s1 }
  0x60   :  { %p1500_p4 = por %p1499_p3, %p1498_p2 }
  0x62   :  { %p1501_p5 = pnand %p1500_p4, %p1494_p1 }
  0x64   :  { %1504 = shalt.err (!%p1501_p5)
}
  0x65   :  { %86 = dma.hbm_to_vmem [thread:$0]  %s1842_s6, 8192, %s1705_s23, [#allocation9], %s1560_s18, %s1560_s18, %s1561_s19  }
  0x66   :  { %s1569_s26 = smov [#allocation13]   ;;  %s1505_s0 = scalar_lea.hbm %s1845_s9, 4096 }
  0x67   :  { %s106_s17 = sshll.u32 %s1569_s26, 4  ;;  %p1506_p6 = scmp.ne.s32.totalorder %s1845_s9, %s1505_s0  ;;  %s107_s17 = int_to_ptr.vmem [resolvable:$true] %s106_s17 }
  0x68   :  { %p1509_p7 = scmp.lt.u32.totalorder %s1505_s0, %s1845_s9 }
  0x6a   :  { %p1511_p8 = pnand %p1509_p7, %p1506_p6 }
  0x6c   :  { %1514 = shalt.err (!%p1511_p8)
}
  0x6d   :  { %s1515_s28 = scalar_lea.vmem %s107_s17, 4096  ;;  %p1520_p10 = scmp.lt.s32.totalorder %s107_s17, %s107_s17 }
  0x6e   :  { %p1516_p9 = scmp.ne.s32.totalorder %s107_s17, %s1515_s28  ;;  %p1521_p11 = scmp.lt.s32.totalorder %s1515_s28, %s1515_s28 }
  0x70   :  { %p1522_p12 = por %p1521_p11, %p1520_p10 }
  0x72   :  { %p1523_p13 = pnand %p1522_p12, %p1516_p9 }
  0x74   :  { %1526 = shalt.err (!%p1523_p13)
}
  0x75   :  { %112 = dma.hbm_to_vmem [thread:$0]  %s1845_s9, 4096, %s107_s17, [#allocation12], %s1565_s7, %s1565_s7, %s1566_s25  }
  0x76   :  { %1549 = dma.done.wait [#allocation3], 512  }
  0x77   :  { %1550 = vsyncadd [#allocation3], 4294966784 }
  0x78   :  { %1551 = dma.done.wait [#allocation6], 5120  }
  0x79   :  { %1552 = vsyncadd [#allocation6], 4294962176 }
  0x7a   :  { %1553 = dma.done.wait [#allocation9], 16384  }
  0x7b   :  { %1554 = vsyncadd [#allocation9], 4294950912 }
  0x7c   :  { %1555 = dma.done.wait [#allocation12], 12288  }
  0x7d   :  { %1556 = vsyncadd [#allocation12], 4294955008  ;;  %v1570_v0 = vmov 0.0   ;;  %v153_v1 = vld [vmem:[#allocation7 + $0x8] sm:$0xff]  ;;  %v155_v2 = vld [vmem:[#allocation7 + $0x18] sm:$0xff]  ;;  %vm1572_vm0 = vmmov 0  }
  0x7e   :  { %260 = vmatprep.mubr.f32.mxu1 %v1570_v0  ;;  %v152_v3 = vld [vmem:[#allocation7] sm:$0xff]  ;;  %v1086_v4 = vpack.c.bf16 %v155_v2, %v153_v1  ;;  %v154_v5 = vld [vmem:[#allocation7 + $0x10] sm:$0xff]  ;;  %v157_v6 = vld [vmem:[#allocation7 + $0x28] sm:$0xff]  ;;  %s1574_s14 = smov [#allocation14]   ;;  %vm1005_vm1 = vcmask 261120  }
  0x7f   :  { %v159_v7 = vld [vmem:[#allocation7 + $0x38] sm:$0xff]  ;;  %v1088_v8 = vpack.c.bf16 %v154_v5, %v152_v3  ;;  %v156_v10 = vld [vmem:[#allocation7 + $0x20] sm:$0xff]  ;;  %v158_v11 = vld [vmem:[#allocation7 + $0x30] sm:$0xff]  ;;  %s1013_s16 = sshll.u32 %s1574_s14, 4  ;;  %s1014_s16 = int_to_ptr.vmem [resolvable:$true] %s1013_s16 }
  0x80   :  { %v1090_v9 = vpack.c.bf16 %v159_v7, %v157_v6  ;;  %v161_v12 = vld [vmem:[#allocation7 + $0x48] sm:$0xff]  ;;  %1087 = vmatprep.subr.bf16.mxu1 %v1086_v4  ;;  %v163_v13 = vld [vmem:[#allocation7 + $0x58] sm:$0xff]  ;;  %v1092_v14 = vpack.c.bf16 %v158_v11, %v156_v10  ;;  %v160_v16 = vld [vmem:[#allocation7 + $0x40] sm:$0xff]  ;;  %s1527_s1 = scalar_lea.vmem %s1014_s16, 128  ;;  %p1532_p1 = scmp.lt.s32.totalorder %s1014_s16, %s1014_s16 }
  0x81   :  { %1089 = vmatpush1.bf16.msra.mxu1 %v1088_v8  ;;  %v1094_v15 = vpack.c.bf16 %v163_v13, %v161_v12  ;;  %v162_v17 = vld [vmem:[#allocation7 + $0x50] sm:$0xff]  ;;  %v165_v18 = vld [vmem:[#allocation7 + $0x68] sm:$0xff]  ;;  %v167_v19 = vld [vmem:[#allocation7 + $0x78] sm:$0xff]  ;;  %p1528_p0 = scmp.ne.s32.totalorder %s1014_s16, %s1527_s1  ;;  %p1533_p2 = scmp.lt.s32.totalorder %s1527_s1, %s1527_s1 }
  0x82   :  { %1091 = vmatprep.subr.bf16.mxu1 %v1090_v9  ;;  %v1096_v20 = vpack.c.bf16 %v162_v17, %v160_v16  ;;  %v1098_v21 = vpack.c.bf16 %v167_v19, %v165_v18  ;;  %v164_v22 = vld [vmem:[#allocation7 + $0x60] sm:$0xff]  ;;  %v166_v23 = vld [vmem:[#allocation7 + $0x70] sm:$0xff]  ;;  %v169_v24 = vld [vmem:[#allocation7 + $0x88] sm:$0xff] }
  0x83   :  { %v171_v25 = vld [vmem:[#allocation7 + $0x98] sm:$0xff]  ;;  %v1100_v26 = vpack.c.bf16 %v166_v23, %v164_v22  ;;  %v168_v28 = vld [vmem:[#allocation7 + $0x80] sm:$0xff]  ;;  %v170_v29 = vld [vmem:[#allocation7 + $0x90] sm:$0xff]  ;;  %p1534_p3 = por %p1533_p2, %p1532_p1 }
  0x84   :  { %v1102_v27 = vpack.c.bf16 %v171_v25, %v169_v24  ;;  %v173_v30 = vld [vmem:[#allocation7 + $0xa8] sm:$0xff]  ;;  %v175_v31 = vld [vmem:[#allocation7 + $0xb8] sm:$0xff]  ;;  %v1104_v32 = vpack.c.bf16 %v170_v29, %v168_v28  ;;  %v172_v34 = vld [vmem:[#allocation7 + $0xa0] sm:$0xff] }
  0x85   :  { %1093 = vmatpush1.bf16.msra.mxu1 %v1092_v14  ;;  %v1106_v33 = vpack.c.bf16 %v175_v31, %v173_v30  ;;  %v174_v35 = vld [vmem:[#allocation7 + $0xb0] sm:$0xff]  ;;  %v177_v36 = vld [vmem:[#allocation7 + $0xc8] sm:$0xff]  ;;  %v179_v37 = vld [vmem:[#allocation7 + $0xd8] sm:$0xff]  ;;  %p1535_p4 = pnand %p1534_p3, %p1528_p0 }
  0x86   :  { %1095 = vmatprep.subr.bf16.mxu1 %v1094_v15  ;;  %v1108_v38 = vpack.c.bf16 %v174_v35, %v172_v34  ;;  %v1110_v39 = vpack.c.bf16 %v179_v37, %v177_v36  ;;  %v176_v40 = vld [vmem:[#allocation7 + $0xc0] sm:$0xff]  ;;  %v178_v41 = vld [vmem:[#allocation7 + $0xd0] sm:$0xff]  ;;  %v181_v42 = vld [vmem:[#allocation7 + $0xe8] sm:$0xff] }
  0x87   :  { %v183_v43 = vld [vmem:[#allocation7 + $0xf8] sm:$0xff]  ;;  %v1112_v44 = vpack.c.bf16 %v178_v41, %v176_v40  ;;  %v180_v46 = vld [vmem:[#allocation7 + $0xe0] sm:$0xff]  ;;  %v182_v47 = vld [vmem:[#allocation7 + $0xf0] sm:$0xff] }
  0x88   :  { %v1114_v45 = vpack.c.bf16 %v183_v43, %v181_v42  ;;  %v294_v48 = vld [vmem:[#allocation8 + $0x8] sm:$0xff]  ;;  %v296_v49 = vld [vmem:[#allocation8 + $0x18] sm:$0xff]  ;;  %v1116_v50 = vpack.c.bf16 %v182_v47, %v180_v46  ;;  %v293_v52 = vld [vmem:[#allocation8] sm:$0xff] }
  0x89   :  { %1097 = vmatpush1.bf16.msra.mxu1 %v1096_v20  ;;  %v1118_v51 = vpack.c.bf16 %v296_v49, %v294_v48  ;;  %v295_v53 = vld [vmem:[#allocation8 + $0x10] sm:$0xff]  ;;  %v298_v54 = vld [vmem:[#allocation8 + $0x28] sm:$0xff]  ;;  %v300_v55 = vld [vmem:[#allocation8 + $0x38] sm:$0xff] }
  0x8a   :  { %1099 = vmatprep.subr.bf16.mxu1 %v1098_v21  ;;  %v140_v56 = vld [vmem:[#allocation2] sm:$0xff]  ;;  %v1120_v57 = vpack.c.bf16 %v295_v53, %v293_v52  ;;  %v1122_v58 = vpack.c.bf16 %v300_v55, %v298_v54  ;;  %v299_v60 = vld [vmem:[#allocation8 + $0x30] sm:$0xff]  ;;  %v302_v61 = vld [vmem:[#allocation8 + $0x48] sm:$0xff] }
  0x8b   :  { %v297_v59 = vld [vmem:[#allocation8 + $0x20] sm:$0xff]  ;;  %v304_v62 = vld [vmem:[#allocation8 + $0x58] sm:$0xff]  ;;  %v141_v1 = vld [vmem:[#allocation2 + $0x8] sm:$0xff] }
  0x8c   :  { %v1124_v63 = vpack.c.bf16 %v299_v60, %v297_v59  ;;  %v1126_v2 = vpack.c.bf16 %v304_v62, %v302_v61  ;;  %v301_v3 = vld [vmem:[#allocation8 + $0x40] sm:$0xff]  ;;  %v303_v4 = vld [vmem:[#allocation8 + $0x50] sm:$0xff]  ;;  %v306_v5 = vld [vmem:[#allocation8 + $0x68] sm:$0xff] }
  0x8d   :  { %1101 = vmatpush1.bf16.msra.mxu1 %v1100_v26  ;;  %v308_v6 = vld [vmem:[#allocation8 + $0x78] sm:$0xff]  ;;  %v1128_v7 = vpack.c.bf16 %v303_v4, %v301_v3  ;;  %v142_v8 = vld [vmem:[#allocation2 + $0x10] sm:$0xff]  ;;  %v305_v10 = vld [vmem:[#allocation8 + $0x60] sm:$0xff] }
  0x8e   :  { %1103 = vmatprep.subr.bf16.mxu1 %v1102_v27  ;;  %v1130_v9 = vpack.c.bf16 %v308_v6, %v306_v5  ;;  %v307_v11 = vld [vmem:[#allocation8 + $0x70] sm:$0xff]  ;;  %v310_v12 = vld [vmem:[#allocation8 + $0x88] sm:$0xff]  ;;  %v312_v13 = vld [vmem:[#allocation8 + $0x98] sm:$0xff] }
  0x8f   :  { %v1132_v14 = vpack.c.bf16 %v307_v11, %v305_v10  ;;  %v143_v15 = vld [vmem:[#allocation2 + $0x18] sm:$0xff]  ;;  %v1134_v16 = vpack.c.bf16 %v312_v13, %v310_v12  ;;  %v309_v17 = vld [vmem:[#allocation8 + $0x80] sm:$0xff]  ;;  %v311_v18 = vld [vmem:[#allocation8 + $0x90] sm:$0xff] }
  0x90   :  { %v145_v19 = vld [vmem:[#allocation5 + $0x8] sm:$0xff]  ;;  %v316_v21 = vld [vmem:[#allocation8 + $0xb8] sm:$0xff]  ;;  %v1136_v22 = vpack.c.bf16 %v311_v18, %v309_v17  ;;  %v313_v24 = vld [vmem:[#allocation8 + $0xa0] sm:$0xff] }
  0x91   :  { %1105 = vmatpush1.bf16.msra.mxu1 %v1104_v32  ;;  %v314_v20 = vld [vmem:[#allocation8 + $0xa8] sm:$0xff]  ;;  %v315_v25 = vld [vmem:[#allocation8 + $0xb0] sm:$0xff]  ;;  %v320_v27 = vld [vmem:[#allocation8 + $0xd8] sm:$0xff] }
  0x92   :  { %1107 = vmatprep.subr.bf16.mxu1 %v1106_v33  ;;  %v1138_v23 = vpack.c.bf16 %v316_v21, %v314_v20  ;;  %v318_v26 = vld [vmem:[#allocation8 + $0xc8] sm:$0xff]  ;;  %v1140_v28 = vpack.c.bf16 %v315_v25, %v313_v24  ;;  %v317_v30 = vld [vmem:[#allocation8 + $0xc0] sm:$0xff]  ;;  %v319_v31 = vld [vmem:[#allocation8 + $0xd0] sm:$0xff] }
  0x93   :  { %v1142_v29 = vpack.c.bf16 %v320_v27, %v318_v26  ;;  %v322_v32 = vld [vmem:[#allocation8 + $0xe8] sm:$0xff]  ;;  %v324_v33 = vld [vmem:[#allocation8 + $0xf8] sm:$0xff]  ;;  %v1144_v34 = vpack.c.bf16 %v319_v31, %v317_v30  ;;  %v321_v36 = vld [vmem:[#allocation8 + $0xe0] sm:$0xff] }
  0x94   :  { %v1146_v35 = vpack.c.bf16 %v324_v33, %v322_v32  ;;  %v323_v37 = vld [vmem:[#allocation8 + $0xf0] sm:$0xff]  ;;  %v325_v42 = vld [vmem:[#allocation8 + $0x100] sm:$0xff]  ;;  %v342_v62 = vld [vmem:[#allocation8 + $0x188] sm:$0xff] }
  0x95   :  { %1109 = vmatpush1.bf16.msra.mxu1 %v1108_v38  ;;  %v326_v38 = vld [vmem:[#allocation8 + $0x108] sm:$0xff]  ;;  %v1148_v40 = vpack.c.bf16 %v323_v37, %v321_v36  ;;  %v327_v43 = vld [vmem:[#allocation8 + $0x110] sm:$0xff]  ;;  %v329_v48 = vld [vmem:[#allocation8 + $0x120] sm:$0xff] }
  0x96   :  { %1111 = vmatprep.subr.bf16.mxu1 %v1110_v39  ;;  %v328_v39 = vld [vmem:[#allocation8 + $0x118] sm:$0xff]  ;;  %v1152_v46 = vpack.c.bf16 %v327_v43, %v325_v42  ;;  %v331_v49 = vld [vmem:[#allocation8 + $0x130] sm:$0xff]  ;;  %v333_v54 = vld [vmem:[#allocation8 + $0x140] sm:$0xff] }
  0x97   :  { %v1150_v41 = vpack.c.bf16 %v328_v39, %v326_v38  ;;  %v1156_v52 = vpack.c.bf16 %v331_v49, %v329_v48  ;;  %v335_v55 = vld [vmem:[#allocation8 + $0x150] sm:$0xff]  ;;  %v337_v60 = vld [vmem:[#allocation8 + $0x160] sm:$0xff]  ;;  %v346_v5 = vld [vmem:[#allocation8 + $0x1a8] sm:$0xff] }
  0x98   :  { %v339_v61 = vld [vmem:[#allocation8 + $0x170] sm:$0xff]  ;;  %v341_v3 = vld [vmem:[#allocation8 + $0x180] sm:$0xff]  ;;  %v348_v6 = vld [vmem:[#allocation8 + $0x1b8] sm:$0xff] }
  0x99   :  { %1113 = vmatpush1.bf16.msra.mxu1 %v1112_v44  ;;  %v330_v44 = vld [vmem:[#allocation8 + $0x128] sm:$0xff]  ;;  %v343_v4 = vld [vmem:[#allocation8 + $0x190] sm:$0xff]  ;;  %v352_v12 = vld [vmem:[#allocation8 + $0x1d8] sm:$0xff] }
  0x9a   :  { %1115 = vmatprep.subr.bf16.mxu1 %v1114_v45  ;;  %v332_v45 = vld [vmem:[#allocation8 + $0x138] sm:$0xff]  ;;  %v347_v10 = vld [vmem:[#allocation8 + $0x1b0] sm:$0xff]  ;;  %v350_v11 = vld [vmem:[#allocation8 + $0x1c8] sm:$0xff] }
  0x9b   :  { %v1154_v47 = vpack.c.bf16 %v332_v45, %v330_v44  ;;  %v354_v17 = vld [vmem:[#allocation8 + $0x1e8] sm:$0xff]  ;;  %v356_v18 = vld [vmem:[#allocation8 + $0x1f8] sm:$0xff]  ;;  %v353_v21 = vld [vmem:[#allocation8 + $0x1e0] sm:$0xff] }
  0x9c   :  { %v1178_v20 = vpack.c.bf16 %v356_v18, %v354_v17  ;;  %v144_v24 = vld [vmem:[#allocation5] sm:$0xff]  ;;  %v147_v25 = vld [vmem:[#allocation5 + $0x18] sm:$0xff]  ;;  %v146_v26 = vld [vmem:[#allocation5 + $0x10] sm:$0xff] }
  0x9d   :  { %1117 = vmatpush1.bf16.msra.mxu1 %v1116_v50  ;;  %v334_v50 = vld [vmem:[#allocation8 + $0x148] sm:$0xff]  ;;  %v150_v30 = vld [vmem:[#allocation5 + $0x30] sm:$0xff]  ;;  %v533_v32 = vld [vmem:[#allocation11 + $0x18] sm:$0xff] }
  0x9e   :  { %1119 = vmatprep.subr.bf16.mxu1 %v1118_v51  ;;  %v336_v51 = vld [vmem:[#allocation8 + $0x158] sm:$0xff]  ;;  %v149_v27 = vld [vmem:[#allocation5 + $0x28] sm:$0xff]  ;;  %v534_v39 = vld [vmem:[#allocation11 + $0x20] sm:$0xff] }
  0x9f   :  { %v1158_v53 = vpack.c.bf16 %v336_v51, %v334_v50  ;;  %v531_v31 = vld [vmem:[#allocation11 + $0x8] sm:$0xff]  ;;  %v537_v38 = vld [vmem:[#allocation11 + $0x38] sm:$0xff] }
  0xa0   :  { %261 = vmatmul.mubr.f32.vlgmr.msra.gmra.mrb[0].mxu1 %v140_v56  ;;  %v338_v56 = vld [vmem:[#allocation8 + $0x168] sm:$0xff]  ;;  %v1182_v33 = vpack.c.bf16 %v533_v32, %v531_v31  ;;  %v541_v43 = vld [vmem:[#allocation11 + $0x58] sm:$0xff]  ;;  %v570_v31 = vld [vmem:[#allocation11 + $0x140] sm:$0xff] }
  0xa1   :  { %1121 = vmatpush1.bf16.msra.mxu1 %v1120_v57  ;;  %266 = vmatprep.mubr.f32.mxu1 %v1570_v0  ;;  %v340_v57 = vld [vmem:[#allocation8 + $0x178] sm:$0xff]  ;;  %v535_v36 = vld [vmem:[#allocation11 + $0x28] sm:$0xff]  ;;  %v572_v32 = vld [vmem:[#allocation11 + $0x150] sm:$0xff] }
  0xa2   :  { %1123 = vmatprep.subr.bf16.mxu1 %v1122_v58  ;;  %v1160_v58 = vpack.c.bf16 %v335_v55, %v333_v54  ;;  %v1162_v59 = vpack.c.bf16 %v340_v57, %v338_v56  ;;  %1183 = vmatprep.subr.bf16.mxu0 %v1182_v33  ;;  %v539_v42 = vld [vmem:[#allocation11 + $0x48] sm:$0xff]  ;;  %v545_v49 = vld [vmem:[#allocation11 + $0x78] sm:$0xff] }
  0xa3   :  { %v1190_v45 = vpack.c.bf16 %v541_v43, %v539_v42  ;;  %v543_v48 = vld [vmem:[#allocation11 + $0x68] sm:$0xff]  ;;  %v549_v55 = vld [vmem:[#allocation11 + $0x98] sm:$0xff]  ;;  %v578_v43 = vld [vmem:[#allocation11 + $0x180] sm:$0xff] }
  0xa4   :  { %267 = vmatmul.mubr.f32.gmra.mrb[2].mxu1 %v141_v1  ;;  %v1164_v1 = vpack.c.bf16 %v339_v61, %v337_v60  ;;  %v1194_v51 = vpack.c.bf16 %v545_v49, %v543_v48  ;;  %v547_v54 = vld [vmem:[#allocation11 + $0x88] sm:$0xff]  ;;  %v553_v61 = vld [vmem:[#allocation11 + $0xb8] sm:$0xff]  ;;  %v582_v49 = vld [vmem:[#allocation11 + $0x1a0] sm:$0xff] }
  0xa5   :  { %1125 = vmatpush1.bf16.msra.mxu1 %v1124_v63  ;;  %272 = vmatprep.mubr.f32.mxu1 %v1570_v0  ;;  %v344_v63 = vld [vmem:[#allocation8 + $0x198] sm:$0xff]  ;;  %v1198_v57 = vpack.c.bf16 %v549_v55, %v547_v54  ;;  %v551_v60 = vld [vmem:[#allocation11 + $0xa8] sm:$0xff]  ;;  %v586_v55 = vld [vmem:[#allocation11 + $0x1c0] sm:$0xff] }
  0xa6   :  { %1127 = vmatprep.subr.bf16.mxu1 %v1126_v2  ;;  %v1166_v2 = vpack.c.bf16 %v344_v63, %v342_v62  ;;  %v1202_v63 = vpack.c.bf16 %v553_v61, %v551_v60  ;;  %v575_v33 = vld [vmem:[#allocation11 + $0x168] sm:$0xff]  ;;  %v590_v61 = vld [vmem:[#allocation11 + $0x1e0] sm:$0xff] }
  0xa8   :  { %273 = vmatmul.mubr.f32.gmra.mrb[4].mxu1 %v142_v8  ;;  %v1170_v8 = vpack.c.bf16 %v348_v6, %v346_v5 }
  0xa9   :  { %1129 = vmatpush1.bf16.msra.mxu1 %v1128_v7  ;;  %278 = vmatprep.mubr.f32.mxu1 %v1570_v0  ;;  %v1168_v7 = vpack.c.bf16 %v343_v4, %v341_v3  ;;  %v555_v3 = vld [vmem:[#allocation11 + $0xc8] sm:$0xff]  ;;  %v557_v4 = vld [vmem:[#allocation11 + $0xd8] sm:$0xff] }
  0xaa   :  { %1131 = vmatprep.subr.bf16.mxu1 %v1130_v9  ;;  %v345_v9 = vld [vmem:[#allocation8 + $0x1a0] sm:$0xff]  ;;  %v1206_v6 = vpack.c.bf16 %v557_v4, %v555_v3 }
  0xab   :  { %v1172_v13 = vpack.c.bf16 %v347_v10, %v345_v9  ;;  %v559_v9 = vld [vmem:[#allocation11 + $0xe8] sm:$0xff]  ;;  %v561_v10 = vld [vmem:[#allocation11 + $0xf8] sm:$0xff] }
  0xac   :  { %279 = vmatmul.mubr.f32.gmra.mrb[6].mxu1 %v143_v15  ;;  %v349_v15 = vld [vmem:[#allocation8 + $0x1c0] sm:$0xff] }
  0xad   :  { %1133 = vmatpush1.bf16.msra.mxu1 %v1132_v14  ;;  %433 = vmatprep.mubr.f32.mxu1 %v145_v19  ;;  %v1174_v14 = vpack.c.bf16 %v352_v12, %v350_v11  ;;  %v1210_v12 = vpack.c.bf16 %v561_v10, %v559_v9 }
  0xae   :  { %1135 = vmatprep.subr.bf16.mxu1 %v1134_v16  ;;  %v351_v16 = vld [vmem:[#allocation8 + $0x1d0] sm:$0xff] }
  0xaf   :  { %v1176_v19 = vpack.c.bf16 %v351_v16, %v349_v15  ;;  %v563_v15 = vld [vmem:[#allocation11 + $0x108] sm:$0xff]  ;;  %v565_v16 = vld [vmem:[#allocation11 + $0x118] sm:$0xff] }
  0xb0   :  { %v1214_v18 = vpack.c.bf16 %v565_v16, %v563_v15  ;;  %v801_v16 = vld [vmem:[#allocation13 + $0x8] sm:$0xff] }
  0xb1   :  { %1137 = vmatpush1.bf16.msra.mxu1 %v1136_v22  ;;  %v355_v22 = vld [vmem:[#allocation8 + $0x1f0] sm:$0xff] }
  0xb2   :  { %1139 = vmatprep.subr.bf16.mxu1 %v1138_v23  ;;  %v1180_v23 = vpack.c.bf16 %v355_v22, %v353_v21  ;;  %v567_v21 = vld [vmem:[#allocation11 + $0x128] sm:$0xff]  ;;  %v569_v22 = vld [vmem:[#allocation11 + $0x138] sm:$0xff] }
  0xb5   :  { %1141 = vmatpush1.bf16.msra.mxu1 %v1140_v28  ;;  %v148_v28 = vld [vmem:[#allocation5 + $0x20] sm:$0xff] }
  0xb6   :  { %1143 = vmatprep.subr.bf16.mxu1 %v1142_v29  ;;  %v151_v29 = vld [vmem:[#allocation5 + $0x38] sm:$0xff] }
  0xb9   :  { %1145 = vmatpush1.bf16.msra.mxu1 %v1144_v34  ;;  %v530_v34 = vld [vmem:[#allocation11] sm:$0xff] }
  0xba   :  { %1147 = vmatprep.subr.bf16.mxu1 %v1146_v35  ;;  %v532_v35 = vld [vmem:[#allocation11 + $0x10] sm:$0xff] }
  0xbb   :  { %v1184_v37 = vpack.c.bf16 %v532_v35, %v530_v34  ;;  %v577_v34 = vld [vmem:[#allocation11 + $0x178] sm:$0xff]  ;;  %v1224_v35 = vpack.c.bf16 %v572_v32, %v570_v31 }
  0xbd   :  { %1149 = vmatpush1.bf16.msra.mxu1 %v1148_v40  ;;  %v536_v40 = vld [vmem:[#allocation11 + $0x30] sm:$0xff]  ;;  %1185 = vmatpush1.bf16.msra.mxu0 %v1184_v37  ;;  %v574_v37 = vld [vmem:[#allocation11 + $0x160] sm:$0xff] }
  0xbe   :  { %1151 = vmatprep.subr.bf16.mxu1 %v1150_v41  ;;  %v1186_v41 = vpack.c.bf16 %v537_v38, %v535_v36  ;;  %v1188_v44 = vpack.c.bf16 %v536_v40, %v534_v39  ;;  %v1226_v36 = vpack.c.bf16 %v577_v34, %v575_v33  ;;  %v576_v38 = vld [vmem:[#allocation11 + $0x170] sm:$0xff]  ;;  %v579_v39 = vld [vmem:[#allocation11 + $0x188] sm:$0xff]  ;;  %v581_v40 = vld [vmem:[#allocation11 + $0x198] sm:$0xff] }
  0xbf   :  { %v1230_v42 = vpack.c.bf16 %v581_v40, %v579_v39  ;;  %v806_v33 = vld [vmem:[#allocation13 + $0x30] sm:$0xff]  ;;  %v807_v34 = vld [vmem:[#allocation13 + $0x38] sm:$0xff]  ;;  %v808_v39 = vld [vmem:[#allocation13 + $0x40] sm:$0xff] }
  0xc0   :  { %1187 = vmatprep.subr.bf16.mxu0 %v1186_v41  ;;  %v1228_v41 = vpack.c.bf16 %v576_v38, %v574_v37  ;;  %v1324_v37 = vpack.c.bf16 %v807_v34, %v806_v33  ;;  %v809_v40 = vld [vmem:[#allocation13 + $0x48] sm:$0xff] }
  0xc1   :  { %1153 = vmatpush1.bf16.msra.mxu1 %v1152_v46  ;;  %v538_v46 = vld [vmem:[#allocation11 + $0x40] sm:$0xff]  ;;  %1189 = vmatpush1.bf16.msra.mxu0 %v1188_v44  ;;  %v580_v44 = vld [vmem:[#allocation11 + $0x190] sm:$0xff] }
  0xc2   :  { %1155 = vmatprep.subr.bf16.mxu1 %v1154_v47  ;;  %v540_v47 = vld [vmem:[#allocation11 + $0x50] sm:$0xff]  ;;  %1191 = vmatprep.subr.bf16.mxu0 %v1190_v45  ;;  %v583_v45 = vld [vmem:[#allocation11 + $0x1a8] sm:$0xff] }
  0xc3   :  { %v1192_v50 = vpack.c.bf16 %v540_v47, %v538_v46  ;;  %v585_v46 = vld [vmem:[#allocation11 + $0x1b8] sm:$0xff]  ;;  %v1232_v47 = vpack.c.bf16 %v580_v44, %v578_v43  ;;  %v1328_v43 = vpack.c.bf16 %v809_v40, %v808_v39 }
  0xc4   :  { %v1234_v48 = vpack.c.bf16 %v585_v46, %v583_v45  ;;  %v810_v45 = vld [vmem:[#allocation13 + $0x50] sm:$0xff]  ;;  %v811_v46 = vld [vmem:[#allocation13 + $0x58] sm:$0xff] }
  0xc5   :  { %1157 = vmatpush1.bf16.msra.mxu1 %v1156_v52  ;;  %v542_v52 = vld [vmem:[#allocation11 + $0x60] sm:$0xff]  ;;  %1193 = vmatpush1.bf16.msra.mxu0 %v1192_v50  ;;  %v584_v50 = vld [vmem:[#allocation11 + $0x1b0] sm:$0xff] }
  0xc6   :  { %1159 = vmatprep.subr.bf16.mxu1 %v1158_v53  ;;  %v544_v53 = vld [vmem:[#allocation11 + $0x70] sm:$0xff]  ;;  %1195 = vmatprep.subr.bf16.mxu0 %v1194_v51  ;;  %v587_v51 = vld [vmem:[#allocation11 + $0x1c8] sm:$0xff] }
  0xc7   :  { %v1196_v56 = vpack.c.bf16 %v544_v53, %v542_v52  ;;  %v589_v52 = vld [vmem:[#allocation11 + $0x1d8] sm:$0xff]  ;;  %v1236_v53 = vpack.c.bf16 %v584_v50, %v582_v49  ;;  %v1332_v49 = vpack.c.bf16 %v811_v46, %v810_v45  ;;  %v480_v45 = vld [vmem:[#allocation10 + $0x70] sm:$0xff] }
  0xc8   :  { %v1238_v54 = vpack.c.bf16 %v589_v52, %v587_v51  ;;  %v186_v51 = vlaneseq }
  0xc9   :  { %1161 = vmatpush1.bf16.msra.mxu1 %v1160_v58  ;;  %v546_v58 = vld [vmem:[#allocation11 + $0x80] sm:$0xff]  ;;  %1197 = vmatpush1.bf16.msra.mxu0 %v1196_v56  ;;  %v588_v56 = vld [vmem:[#allocation11 + $0x1d0] sm:$0xff] }
  0xca   :  { %1163 = vmatprep.subr.bf16.mxu1 %v1162_v59  ;;  %v548_v59 = vld [vmem:[#allocation11 + $0x90] sm:$0xff]  ;;  %1199 = vmatprep.subr.bf16.mxu0 %v1198_v57  ;;  %v1240_v57 = vpack.c.bf16 %v588_v56, %v586_v55  ;;  %v187_v52 = vshrl.u32 %v186_v51, 7 }
  0xcb   :  { %v1200_v62 = vpack.c.bf16 %v548_v59, %v546_v58  ;;  %v591_v58 = vld [vmem:[#allocation11 + $0x1e8] sm:$0xff]  ;;  %v593_v59 = vld [vmem:[#allocation11 + $0x1f8] sm:$0xff] }
  0xcc   :  { %v1242_v60 = vpack.c.bf16 %v593_v59, %v591_v58  ;;  %v1782_v55 = vsub.s32 1, %v187_v52 }
  0xcd   :  { %1165 = vmatpush1.bf16.msra.mxu1 %v1164_v1  ;;  %v550_v1 = vld [vmem:[#allocation11 + $0xa0] sm:$0xff]  ;;  %1201 = vmatpush1.bf16.msra.mxu0 %v1200_v62  ;;  %v592_v62 = vld [vmem:[#allocation11 + $0x1f0] sm:$0xff] }
  0xce   :  { %1167 = vmatprep.subr.bf16.mxu1 %v1166_v2  ;;  %v552_v2 = vld [vmem:[#allocation11 + $0xb0] sm:$0xff]  ;;  %1203 = vmatprep.subr.bf16.mxu0 %v1202_v63  ;;  %v1244_v63 = vpack.c.bf16 %v592_v62, %v590_v61  ;;  %v466_v61 = vld [vmem:[#allocation10] sm:$0xff] }
  0xcf   :  { %v1204_v5 = vpack.c.bf16 %v552_v2, %v550_v1  ;;  %v467_v1 = vld [vmem:[#allocation10 + $0x8] sm:$0xff]  ;;  %v469_v2 = vld [vmem:[#allocation10 + $0x18] sm:$0xff]  ;;  %v468_v62 = vld [vmem:[#allocation10 + $0x10] sm:$0xff] }
  0xd0   :  { %v1246_v3 = vpack.c.bf16 %v469_v2, %v467_v1  ;;  %v471_v1 = vld [vmem:[#allocation10 + $0x28] sm:$0xff]  ;;  %v473_v2 = vld [vmem:[#allocation10 + $0x38] sm:$0xff] }
  0xd1   :  { %1169 = vmatpush1.bf16.msra.mxu1 %v1168_v7  ;;  %v554_v7 = vld [vmem:[#allocation11 + $0xc0] sm:$0xff]  ;;  %1205 = vmatpush1.bf16.msra.mxu0 %v1204_v5 }
  0xd2   :  { %1171 = vmatprep.subr.bf16.mxu1 %v1170_v8  ;;  %v556_v8 = vld [vmem:[#allocation11 + $0xd0] sm:$0xff]  ;;  %1207 = vmatprep.subr.bf16.mxu0 %v1206_v6 }
  0xd3   :  { %v1208_v11 = vpack.c.bf16 %v556_v8, %v554_v7 }
  0xd5   :  { %1173 = vmatpush1.bf16.msra.mxu1 %v1172_v13  ;;  %v558_v13 = vld [vmem:[#allocation11 + $0xe0] sm:$0xff]  ;;  %1209 = vmatpush1.bf16.msra.mxu0 %v1208_v11 }
  0xd6   :  { %1175 = vmatprep.subr.bf16.mxu1 %v1174_v14  ;;  %v560_v14 = vld [vmem:[#allocation11 + $0xf0] sm:$0xff]  ;;  %1211 = vmatprep.subr.bf16.mxu0 %v1210_v12  ;;  %v816_v12 = vld [vmem:[#allocation13 + $0x80] sm:$0xff] }
  0xd7   :  { %v1212_v17 = vpack.c.bf16 %v560_v14, %v558_v13  ;;  %v817_v13 = vld [vmem:[#allocation13 + $0x88] sm:$0xff]  ;;  %v800_v14 = vld [vmem:[#allocation13] sm:$0xff] }
  0xd8   :  { %v1310_v15 = vpack.c.bf16 %v817_v13, %v816_v12  ;;  %v1248_v13 = vpack.c.bf16 %v468_v62, %v466_v61  ;;  %v489_v61 = vld [vmem:[#allocation10 + $0xb8] sm:$0xff]  ;;  %v486_v62 = vld [vmem:[#allocation10 + $0xa0] sm:$0xff] }
  0xd9   :  { %1177 = vmatpush1.bf16.msra.mxu1 %v1176_v19  ;;  %v562_v19 = vld [vmem:[#allocation11 + $0x100] sm:$0xff]  ;;  %1213 = vmatpush1.bf16.msra.mxu0 %v1212_v17  ;;  %v818_v17 = vld [vmem:[#allocation13 + $0x90] sm:$0xff] }
  0xda   :  { %1179 = vmatprep.subr.bf16.mxu1 %v1178_v20  ;;  %v564_v20 = vld [vmem:[#allocation11 + $0x110] sm:$0xff]  ;;  %1215 = vmatprep.subr.bf16.mxu0 %v1214_v18  ;;  %v819_v18 = vld [vmem:[#allocation13 + $0x98] sm:$0xff] }
  0xdd   :  { %1181 = vmatpush1.bf16.msra.mxu1 %v1180_v23  ;;  %v1216_v23 = vpack.c.bf16 %v564_v20, %v562_v19  ;;  %v1312_v19 = vpack.c.bf16 %v801_v16, %v800_v14  ;;  %v1314_v20 = vpack.c.bf16 %v819_v18, %v818_v17  ;;  %v1250_v17 = vpack.c.bf16 %v473_v2, %v471_v1  ;;  %v470_v18 = vld [vmem:[#allocation10 + $0x20] sm:$0xff]  ;;  %v491_v1 = vld [vmem:[#allocation10 + $0xc8] sm:$0xff]  ;;  %v493_v2 = vld [vmem:[#allocation10 + $0xd8] sm:$0xff] }
  0xde   :  { %1311 = vmatprep.subr.bf16.mxu1 %v1310_v15 }
  0xdf   :  { %1217 = vmatpush1.bf16.msra.mxu0 %v1216_v23  ;;  %v820_v23 = vld [vmem:[#allocation13 + $0xa0] sm:$0xff] }
  0xe0   :  { %434 = vmatmul.mubr.f32.vlgmr.msra.gmra.mrb[8].mxu1 %v144_v24  ;;  %v1218_v24 = vpack.c.bf16 %v569_v22, %v567_v21  ;;  %v802_v21 = vld [vmem:[#allocation13 + $0x10] sm:$0xff]  ;;  %v803_v22 = vld [vmem:[#allocation13 + $0x18] sm:$0xff] }
  0xe1   :  { %439 = vmatprep.mubr.f32.mxu1 %v147_v25  ;;  %v566_v25 = vld [vmem:[#allocation11 + $0x120] sm:$0xff]  ;;  %1313 = vmatpush3.bf16.msra.mxu1 %v1312_v19  ;;  %v472_v19 = vld [vmem:[#allocation10 + $0x30] sm:$0xff] }
  0xe2   :  { %1219 = vmatprep.subr.bf16.mxu0 %v1218_v24  ;;  %v821_v24 = vld [vmem:[#allocation13 + $0xa8] sm:$0xff]  ;;  %1315 = vmatprep.subr.bf16.mxu1 %v1314_v20 }
  0xe4   :  { %440 = vmatmul.mubr.f32.gmra.mrb[10].mxu1 %v146_v26  ;;  %v568_v26 = vld [vmem:[#allocation11 + $0x130] sm:$0xff] }
  0xe5   :  { %445 = vmatprep.mubr.f32.mxu1 %v149_v27  ;;  %v571_v27 = vld [vmem:[#allocation11 + $0x148] sm:$0xff] }
  0xe8   :  { %446 = vmatmul.mubr.f32.gmra.mrb[12].mxu1 %v148_v28  ;;  %v573_v28 = vld [vmem:[#allocation11 + $0x158] sm:$0xff] }
  0xe9   :  { %451 = vmatprep.mubr.f32.mxu1 %v151_v29  ;;  %v1220_v29 = vpack.c.bf16 %v568_v26, %v566_v25  ;;  %v1316_v25 = vpack.c.bf16 %v803_v22, %v802_v21  ;;  %v1318_v26 = vpack.c.bf16 %v821_v24, %v820_v23  ;;  %v475_v21 = vld [vmem:[#allocation10 + $0x48] sm:$0xff]  ;;  %v477_v22 = vld [vmem:[#allocation10 + $0x58] sm:$0xff]  ;;  %v1789_v23 = vld [vmem:[%s1839_s3] sm:$0x3] }
  0xea   :  { %v1793_v33 = vrot.slane %v1789_v23, %v1782_v55 }
  0xeb   :  { %1221 = vmatpush1.bf16.msra.mxu0 %v1220_v29  ;;  %v822_v29 = vld [vmem:[#allocation13 + $0xb0] sm:$0xff]  ;;  %1317 = vmatpush3.bf16.msra.mxu1 %v1316_v25 }
  0xec   :  { %452 = vmatmul.mubr.f32.gmra.mrb[14].mxu1 %v150_v30  ;;  %v1222_v30 = vpack.c.bf16 %v573_v28, %v571_v27  ;;  %v804_v27 = vld [vmem:[#allocation13 + $0x20] sm:$0xff]  ;;  %v805_v28 = vld [vmem:[#allocation13 + $0x28] sm:$0xff]  ;;  %1319 = vmatprep.subr.bf16.mxu1 %v1318_v26 }
  0xed   :  { %v1320_v31 = vpack.c.bf16 %v805_v28, %v804_v27  ;;  %v1252_v27 = vpack.c.bf16 %v472_v19, %v470_v18  ;;  %v494_v19 = vld [vmem:[#allocation10 + $0xe0] sm:$0xff] }
  0xee   :  { %1223 = vmatprep.subr.bf16.mxu0 %v1222_v30  ;;  %v823_v30 = vld [vmem:[#allocation13 + $0xb8] sm:$0xff] }
  0xef   :  { %1225 = vmatpush1.bf16.msra.mxu0 %v1224_v35  ;;  %v1322_v32 = vpack.c.bf16 %v823_v30, %v822_v29  ;;  %v824_v35 = vld [vmem:[#allocation13 + $0xc0] sm:$0xff]  ;;  %1321 = vmatpush3.bf16.msra.mxu1 %v1320_v31  ;;  %v1254_v30 = vpack.c.bf16 %v477_v22, %v475_v21  ;;  %v499_v21 = vld [vmem:[#allocation10 + $0x108] sm:$0xff]  ;;  %v501_v22 = vld [vmem:[#allocation10 + $0x118] sm:$0xff] }
  0xf0   :  { %1227 = vmatprep.subr.bf16.mxu0 %v1226_v36  ;;  %v825_v36 = vld [vmem:[#allocation13 + $0xc8] sm:$0xff]  ;;  %v474_v31 = vld [vmem:[#allocation10 + $0x40] sm:$0xff] }
  0xf1   :  { %1323 = vmatprep.subr.bf16.mxu1 %v1322_v32  ;;  %v1326_v38 = vpack.c.bf16 %v825_v36, %v824_v35  ;;  %v476_v32 = vld [vmem:[#allocation10 + $0x50] sm:$0xff]  ;;  %v479_v35 = vld [vmem:[#allocation10 + $0x68] sm:$0xff]  ;;  %v481_v36 = vld [vmem:[#allocation10 + $0x78] sm:$0xff] }
  0xf2   :  { %v1256_v40 = vpack.c.bf16 %v476_v32, %v474_v31  ;;  %v502_v32 = vld [vmem:[#allocation10 + $0x120] sm:$0xff] }
  0xf3   :  { %1229 = vmatpush1.bf16.msra.mxu0 %v1228_v41  ;;  %v826_v41 = vld [vmem:[#allocation13 + $0xd0] sm:$0xff]  ;;  %1325 = vmatpush3.bf16.msra.mxu1 %v1324_v37 }
  0xf4   :  { %1231 = vmatprep.subr.bf16.mxu0 %v1230_v42  ;;  %v827_v42 = vld [vmem:[#allocation13 + $0xd8] sm:$0xff]  ;;  %1327 = vmatprep.subr.bf16.mxu1 %v1326_v38 }
  0xf5   :  { %v1330_v44 = vpack.c.bf16 %v827_v42, %v826_v41 }
  0xf7   :  { %1233 = vmatpush1.bf16.msra.mxu0 %v1232_v47  ;;  %v828_v47 = vld [vmem:[#allocation13 + $0xe0] sm:$0xff]  ;;  %1329 = vmatpush3.bf16.msra.mxu1 %v1328_v43  ;;  %v1258_v43 = vpack.c.bf16 %v481_v36, %v479_v35  ;;  %v507_v35 = vld [vmem:[#allocation10 + $0x148] sm:$0xff]  ;;  %v509_v36 = vld [vmem:[#allocation10 + $0x158] sm:$0xff] }
  0xf8   :  { %1235 = vmatprep.subr.bf16.mxu0 %v1234_v48  ;;  %v829_v48 = vld [vmem:[#allocation13 + $0xe8] sm:$0xff]  ;;  %1331 = vmatprep.subr.bf16.mxu1 %v1330_v44  ;;  %v478_v44 = vld [vmem:[#allocation10 + $0x60] sm:$0xff] }
  0xf9   :  { %v1334_v50 = vpack.c.bf16 %v829_v48, %v828_v47  ;;  %v483_v48 = vld [vmem:[#allocation10 + $0x88] sm:$0xff] }
  0xfb   :  { %1237 = vmatpush1.bf16.msra.mxu0 %v1236_v53  ;;  %1333 = vmatpush3.bf16.msra.mxu1 %v1332_v49  ;;  %v357_v53 = vld [vmem:[%s1841_s5] sm:$0x3]  ;;  %v485_v49 = vld [vmem:[#allocation10 + $0x98] sm:$0xff] }
  0xfc   :  { %1239 = vmatprep.subr.bf16.mxu0 %v1238_v54  ;;  %1335 = vmatprep.subr.bf16.mxu1 %v1334_v50  ;;  %v1780_v54 = vsub.s32 0, %v187_v52  ;;  %v1260_v52 = vpack.c.bf16 %v480_v45, %v478_v44  ;;  %v510_v45 = vld [vmem:[#allocation10 + $0x160] sm:$0xff] }
  0xfe   :  { %v362_v56 = vrot.slane %v357_v53, %v1780_v54 }
  0xff   :  { %1241 = vmatpush1.bf16.msra.mxu0 %v1240_v57  ;;  %v366_v57 = vrot.slane %v357_v53, %v1782_v55  ;;  %v1262_v53 = vpack.c.bf16 %v485_v49, %v483_v48  ;;  %v517_v48 = vld [vmem:[#allocation10 + $0x198] sm:$0xff] }
 0x100   :  { %1243 = vmatprep.subr.bf16.mxu0 %v1242_v60 }
 0x103   :  { %1245 = vmatpush1.bf16.msra.mxu0 %v1244_v63 }
 0x104   :  { %1247 = vmatprep.subr.bf16.mxu0 %v1246_v3 }
 0x173   :  { %v1761_v4 = vpop.f32.mrb[0].mxu1 }
 0x174   :  { %v1763_v5 = vpop.f32.mrb[1].mxu1 }
 0x175   :  { %v265_v46 = vadd.f32 %v1763_v5, %v1793_v33 }
 0x177   :  { %v1765_v6 = vpop.f32.mrb[2].mxu1 }
 0x178   :  { %v1767_v7 = vpop.f32.mrb[3].mxu1 }
 0x17b   :  { %v1769_v8 = vpop.f32.mrb[4].mxu1 }
 0x17c   :  { %v1771_v9 = vpop.f32.mrb[5].mxu1 }
 0x17f   :  { %v1773_v10 = vpop.f32.mrb[6].mxu1 }
 0x180   :  { %v1775_v11 = vpop.f32.mrb[7].mxu1 }
 0x1b3   :  { %v435_v58 = vpop.f32.mrb[8].mxu1 }
 0x1b4   :  { %v436_v59 = vadd.f32 %v435_v58, %v362_v56  ;;  %v437_v60 = vpop.f32.mrb[9].mxu1  ;;  %v484_v58 = vld [vmem:[#allocation10 + $0x90] sm:$0xff] }
 0x1b5   :  { %v438_v63 = vadd.f32 %v437_v60, %v366_v57  ;;  %v487_v60 = vld [vmem:[#allocation10 + $0xa8] sm:$0xff] }
 0x1b6   :  { %v458_v14 = vmax.f32 %v436_v59, 0.0  ;;  %v286_v59 = vmax.f32 %v265_v46, 0.0  ;;  %v512_v46 = vld [vmem:[#allocation10 + $0x170] sm:$0xff] }
 0x1b7   :  { %v441_v3 = vpop.f32.mrb[10].mxu1  ;;  %v459_v12 = vmax.f32 %v438_v63, 0.0  ;;  %v488_v63 = vld [vmem:[#allocation10 + $0xb0] sm:$0xff]  ;;  %v1292_v49 = vpack.c.bf16 %v512_v46, %v510_v45 }
 0x1b8   :  { %v442_v15 = vadd.f32 %v441_v3, %v362_v56  ;;  %v443_v16 = vpop.f32.mrb[11].mxu1  ;;  %v1268_v3 = vpack.c.bf16 %v488_v63, %v486_v62 }
 0x1b9   :  { %v444_v20 = vadd.f32 %v443_v16, %v366_v57  ;;  %658 = vmatprep.mubr.f32.mxu0 %v459_v12  ;;  %v1270_v12 = vpack.c.bf16 %v493_v2, %v491_v1  ;;  %v497_v16 = vld [vmem:[#allocation10 + $0xf8] sm:$0xff]  ;;  %v522_v1 = vld [vmem:[#allocation10 + $0x1c0] sm:$0xff]  ;;  %v524_v2 = vld [vmem:[#allocation10 + $0x1d0] sm:$0xff] }
 0x1ba   :  { %v460_v24 = vmax.f32 %v442_v15, 0.0  ;;  %659 = vmatmul.mubr.f32.vlgmr.msra.gmra.mrb[0].mxu0 %v458_v14  ;;  %v492_v14 = vld [vmem:[#allocation10 + $0xd0] sm:$0xff]  ;;  %v495_v15 = vld [vmem:[#allocation10 + $0xe8] sm:$0xff] }
 0x1bb   :  { %v461_v25 = vmax.f32 %v444_v20, 0.0  ;;  %1249 = vmatpush1.bf16.msra.mxu0 %v1248_v13  ;;  %v447_v26 = vpop.f32.mrb[12].mxu1  ;;  %v490_v13 = vld [vmem:[#allocation10 + $0xc0] sm:$0xff]  ;;  %v1274_v18 = vpack.c.bf16 %v497_v16, %v495_v15  ;;  %v496_v20 = vld [vmem:[#allocation10 + $0xf0] sm:$0xff] }
 0x1bc   :  { %v448_v28 = vadd.f32 %v447_v26, %v362_v56  ;;  %v449_v29 = vpop.f32.mrb[13].mxu1  ;;  %1251 = vmatprep.subr.bf16.mxu0 %v1250_v17  ;;  %v1272_v17 = vpack.c.bf16 %v492_v14, %v490_v13  ;;  %v498_v26 = vld [vmem:[#allocation10 + $0x100] sm:$0xff]  ;;  %v1304_v13 = vpack.c.bf16 %v524_v2, %v522_v1  ;;  %v189_v14 = vrot.slane %v1789_v23, %v1780_v54 }
 0x1bd   :  { %v450_v34 = vadd.f32 %v449_v29, %v366_v57  ;;  %664 = vmatprep.mubr.f32.mxu0 %v461_v25  ;;  %v1278_v25 = vpack.c.bf16 %v501_v22, %v499_v21  ;;  %v505_v29 = vld [vmem:[#allocation10 + $0x138] sm:$0xff]  ;;  %v526_v16 = vld [vmem:[#allocation10 + $0x1e0] sm:$0xff]  ;;  %v277_v23 = vadd.f32 %v1771_v9, %v1793_v33 }
 0x1be   :  { %v462_v37 = vmax.f32 %v448_v28, 0.0  ;;  %665 = vmatmul.mubr.f32.gmra.mrb[2].mxu0 %v460_v24  ;;  %v1276_v24 = vpack.c.bf16 %v496_v20, %v494_v19  ;;  %v503_v28 = vld [vmem:[#allocation10 + $0x128] sm:$0xff]  ;;  %v263_v19 = vadd.f32 %v1761_v4, %v189_v14  ;;  %v271_v20 = vadd.f32 %v1767_v7, %v1793_v33  ;;  %v812_v9 = vld [vmem:[#allocation13 + $0x60] sm:$0xff] }
 0x1bf   :  { %v463_v38 = vmax.f32 %v450_v34, 0.0  ;;  %1253 = vmatpush1.bf16.msra.mxu0 %v1252_v27  ;;  %v453_v39 = vpop.f32.mrb[14].mxu1  ;;  %v500_v27 = vld [vmem:[#allocation10 + $0x110] sm:$0xff]  ;;  %v1282_v31 = vpack.c.bf16 %v505_v29, %v503_v28  ;;  %v269_v22 = vadd.f32 %v1765_v6, %v189_v14  ;;  %v283_v4 = vadd.f32 %v1775_v11, %v1793_v33 }
 0x1c0   :  { %v454_v41 = vadd.f32 %v453_v39, %v362_v56  ;;  %v455_v42 = vpop.f32.mrb[15].mxu1  ;;  %1255 = vmatprep.subr.bf16.mxu0 %v1254_v30  ;;  %v482_v56 = vld [vmem:[#allocation10 + $0x80] sm:$0xff]  ;;  %v1280_v30 = vpack.c.bf16 %v500_v27, %v498_v26  ;;  %v504_v34 = vld [vmem:[#allocation10 + $0x130] sm:$0xff]  ;;  %v285_v21 = vmax.f32 %v263_v19, 0.0  ;;  %v275_v26 = vadd.f32 %v1769_v8, %v189_v14  ;;  %v831_v8 = vld [vmem:[#allocation13 + $0xf8] sm:$0xff] }
 0x1c1   :  { %v456_v47 = vadd.f32 %v455_v42, %v366_v57  ;;  %670 = vmatprep.mubr.f32.mxu0 %v463_v38  ;;  %v1264_v5 = vpack.c.bf16 %v484_v58, %v482_v56  ;;  %v1266_v57 = vpack.c.bf16 %v489_v61, %v487_v60  ;;  %v1286_v38 = vpack.c.bf16 %v509_v36, %v507_v35  ;;  %v506_v39 = vld [vmem:[#allocation10 + $0x140] sm:$0xff]  ;;  %v513_v42 = vld [vmem:[#allocation10 + $0x178] sm:$0xff]  ;;  %v520_v61 = vld [vmem:[#allocation10 + $0x1b0] sm:$0xff] }
 0x1c2   :  { %v464_v50 = vmax.f32 %v454_v41, 0.0  ;;  %671 = vmatmul.mubr.f32.gmra.mrb[4].mxu0 %v462_v37  ;;  %v1284_v37 = vpack.c.bf16 %v504_v34, %v502_v32  ;;  %v511_v41 = vld [vmem:[#allocation10 + $0x168] sm:$0xff]  ;;  %v521_v56 = vld [vmem:[#allocation10 + $0x1b8] sm:$0xff]  ;;  %v518_v60 = vld [vmem:[#allocation10 + $0x1a0] sm:$0xff]  ;;  %v290_v27 = vmax.f32 %v277_v23, 0.0  ;;  %v289_v7 = vmax.f32 %v275_v26, 0.0 }
 0x1c3   :  { %v465_v51 = vmax.f32 %v456_v47, 0.0  ;;  %1257 = vmatpush1.bf16.msra.mxu0 %v1256_v40  ;;  %v508_v40 = vld [vmem:[#allocation10 + $0x150] sm:$0xff]  ;;  %v1290_v44 = vpack.c.bf16 %v513_v42, %v511_v41  ;;  %v515_v47 = vld [vmem:[#allocation10 + $0x188] sm:$0xff]  ;;  %v1300_v62 = vpack.c.bf16 %v520_v61, %v518_v60  ;;  %v281_v28 = vadd.f32 %v1773_v10, %v189_v14  ;;  %v815_v36 = vld [vmem:[#allocation13 + $0x78] sm:$0xff] }
 0x1c4   :  { %1259 = vmatprep.subr.bf16.mxu0 %v1258_v43  ;;  %v1288_v43 = vpack.c.bf16 %v508_v40, %v506_v39  ;;  %v292_v29 = vmax.f32 %v283_v4, 0.0  ;;  %v830_v32 = vld [vmem:[#allocation13 + $0xf0] sm:$0xff]  ;;  %v772_v10 = vld [vmem:[%s1844_s8] sm:$0x3] }
 0x1c5   :  { %676 = vmatprep.mubr.f32.mxu0 %v465_v51  ;;  %v514_v51 = vld [vmem:[#allocation10 + $0x180] sm:$0xff]  ;;  %v291_v6 = vmax.f32 %v281_v28, 0.0  ;;  %v1338_v34 = vpack.c.bf16 %v831_v8, %v830_v32  ;;  %v814_v35 = vld [vmem:[#allocation13 + $0x70] sm:$0xff]  ;;  %v777_v33 = vrot.slane %v772_v10, %v1780_v54 }
 0x1c6   :  { %677 = vmatmul.mubr.f32.gmra.mrb[6].mxu0 %v464_v50  ;;  %v1294_v50 = vpack.c.bf16 %v517_v48, %v515_v47  ;;  %v1340_v11 = vpack.c.bf16 %v815_v36, %v814_v35 }
 0x1c7   :  { %1261 = vmatpush1.bf16.msra.mxu0 %v1260_v52  ;;  %747 = vmatprep.mubr.f32.mxu0 %v286_v59  ;;  %v516_v52 = vld [vmem:[#allocation10 + $0x190] sm:$0xff] }
 0x1c8   :  { %1263 = vmatprep.subr.bf16.mxu0 %v1262_v53  ;;  %v519_v53 = vld [vmem:[#allocation10 + $0x1a8] sm:$0xff]  ;;  %v1296_v58 = vpack.c.bf16 %v516_v52, %v514_v51 }
 0x1c9   :  { %v1298_v59 = vpack.c.bf16 %v521_v56, %v519_v53 }
 0x1cb   :  { %1265 = vmatpush1.bf16.msra.mxu0 %v1264_v5  ;;  %v523_v5 = vld [vmem:[#allocation10 + $0x1c8] sm:$0xff] }
 0x1cc   :  { %1267 = vmatprep.subr.bf16.mxu0 %v1266_v57  ;;  %v525_v57 = vld [vmem:[#allocation10 + $0x1d8] sm:$0xff] }
 0x1cd   :  { %v1302_v63 = vpack.c.bf16 %v525_v57, %v523_v5  ;;  %v1571_v57 = vmov 0.0|0.0  }
 0x1cf   :  { %1269 = vmatpush1.bf16.msra.mxu0 %v1268_v3  ;;  %v527_v3 = vld [vmem:[#allocation10 + $0x1e8] sm:$0xff] }
 0x1d0   :  { %1271 = vmatprep.subr.bf16.mxu0 %v1270_v12  ;;  %v529_v12 = vld [vmem:[#allocation10 + $0x1f8] sm:$0xff] }
 0x1d1   :  { %v1306_v15 = vpack.c.bf16 %v529_v12, %v527_v3  ;;  %v1025_v12 = vld [vmem:[%s1846_s10] ss:$0 sm:$0xff] }
 0x1d3   :  { %1273 = vmatpush1.bf16.msra.mxu0 %v1272_v17  ;;  %v528_v17 = vld [vmem:[#allocation10 + $0x1f0] sm:$0xff] }
 0x1d4   :  { %1275 = vmatprep.subr.bf16.mxu0 %v1274_v18  ;;  %v1308_v18 = vpack.c.bf16 %v528_v17, %v526_v16 }
 0x1d7   :  { %1277 = vmatpush1.bf16.msra.mxu0 %v1276_v24  ;;  %v288_v24 = vmax.f32 %v271_v20, 0.0 }
 0x1d8   :  { %1279 = vmatprep.subr.bf16.mxu0 %v1278_v25  ;;  %v287_v25 = vmax.f32 %v269_v22, 0.0 }
 0x1db   :  { %1281 = vmatpush1.bf16.msra.mxu0 %v1280_v30  ;;  %v813_v30 = vld [vmem:[#allocation13 + $0x68] sm:$0xff] }
 0x1dc   :  { %1283 = vmatprep.subr.bf16.mxu0 %v1282_v31  ;;  %v1336_v31 = vpack.c.bf16 %v813_v30, %v812_v9 }
 0x1de   :  { %1337 = vmatpush3.bf16.msra.mxu1 %v1336_v31 }
 0x1df   :  { %1285 = vmatpush1.bf16.msra.mxu0 %v1284_v37  ;;  %1339 = vmatprep.subr.bf16.mxu1 %v1338_v34  ;;  %v781_v37 = vrot.slane %v772_v10, %v1782_v55 }
 0x1e0   :  { %1287 = vmatprep.subr.bf16.mxu0 %v1286_v38 }
 0x1e2   :  { %1341 = vmatpush3.bf16.msra.mxu1 %v1340_v11 }
 0x1e3   :  { %1289 = vmatpush1.bf16.msra.mxu0 %v1288_v43  ;;  %1342 = vmatprep.subr.bf16.mxu1 %v1571_v57 }
 0x1e4   :  { %1291 = vmatprep.subr.bf16.mxu0 %v1290_v44 }
 0x1e7   :  { %1293 = vmatpush1.bf16.msra.mxu0 %v1292_v49 }
 0x1e8   :  { %1295 = vmatprep.subr.bf16.mxu0 %v1294_v50 }
 0x1eb   :  { %1297 = vmatpush1.bf16.msra.mxu0 %v1296_v58 }
 0x1ec   :  { %1299 = vmatprep.subr.bf16.mxu0 %v1298_v59 }
 0x1ef   :  { %1301 = vmatpush1.bf16.msra.mxu0 %v1300_v62  ;;  %v929_v62 = vld [vmem:[%s1848_s12] sm:$0xff] }
 0x1f0   :  { %1303 = vmatprep.subr.bf16.mxu0 %v1302_v63  ;;  %v1573_v63 = vmov 0  }
 0x1f1   :  { %1372 = vset.pattern.permute.xlu0 %v1573_v63 }
 0x1f2   :  { %932 = vperm.xlu0 %1372, %v929_v62  }
 0x1f3   :  { %1305 = vmatpush1.bf16.msra.mxu0 %v1304_v13 }
 0x1f4   :  { %1307 = vmatprep.subr.bf16.mxu0 %v1306_v15 }
 0x1f7   :  { %1309 = vmatpush1.bf16.msra.mxu0 %v1308_v18 }
 0x1fa   :  { %748 = vmatmul.mubr.f32.vlgmr.msra.gmra.mrb[0].mxu0 %v285_v21 }
 0x1fb   :  { %753 = vmatprep.mubr.f32.mxu0 %v288_v24 }
 0x1fe   :  { %754 = vmatmul.mubr.f32.gmra.mrb[2].mxu0 %v287_v25 }
 0x1ff   :  { %759 = vmatprep.mubr.f32.mxu0 %v290_v27 }
 0x202   :  { %760 = vmatmul.mubr.f32.gmra.mrb[4].mxu0 %v289_v7 }
 0x203   :  { %765 = vmatprep.mubr.f32.mxu0 %v292_v29  ;;  %v928_v29 = vld [vmem:[%s1847_s11] sm:$0xff] }
 0x206   :  { %766 = vmatmul.mubr.f32.gmra.mrb[6].mxu0 %v291_v6 }
 0x271   :  { %v933_v6 = vpop.permute.xlu0 %932 }
 0x2cd   :  { %v749_v38 = vpop.f32.mrb[0].mxu0 }
 0x2ce   :  { %v784_v39 = vadd.f32 %v777_v33, %v749_v38  ;;  %v751_v40 = vpop.f32.mrb[1].mxu0 }
 0x2cf   :  { %v785_v41 = vadd.f32 %v781_v37, %v751_v40 }
 0x2d0   :  { %v792_v44 = vmax.f32 %v784_v39, 0.0 }
 0x2d1   :  { %v793_v42 = vmax.f32 %v785_v41, 0.0  ;;  %v755_v43 = vpop.f32.mrb[2].mxu0 }
 0x2d2   :  { %v786_v45 = vadd.f32 %v777_v33, %v755_v43  ;;  %v757_v46 = vpop.f32.mrb[3].mxu0 }
 0x2d3   :  { %v787_v47 = vadd.f32 %v781_v37, %v757_v46  ;;  %903 = vmatprep.mubr.f32.mxu1 %v793_v42 }
 0x2d4   :  { %904 = vmatmul.mubr.f32.vlgmr.msra.gmra.mrb[16].mxu1 %v792_v44  ;;  %v794_v50 = vmax.f32 %v786_v45, 0.0 }
 0x2d5   :  { %v795_v48 = vmax.f32 %v787_v47, 0.0  ;;  %v761_v49 = vpop.f32.mrb[4].mxu0 }
 0x2d6   :  { %v788_v51 = vadd.f32 %v777_v33, %v761_v49  ;;  %v763_v52 = vpop.f32.mrb[5].mxu0 }
 0x2d7   :  { %v789_v54 = vadd.f32 %v781_v37, %v763_v52  ;;  %908 = vmatprep.mubr.f32.mxu1 %v795_v48 }
 0x2d8   :  { %909 = vmatmul.mubr.f32.gmra.mrb[18].mxu1 %v794_v50  ;;  %v796_v56 = vmax.f32 %v788_v51, 0.0 }
 0x2d9   :  { %v797_v55 = vmax.f32 %v789_v54, 0.0  ;;  %v767_v53 = vpop.f32.mrb[6].mxu0 }
 0x2da   :  { %v790_v58 = vadd.f32 %v777_v33, %v767_v53  ;;  %v769_v59 = vpop.f32.mrb[7].mxu0 }
 0x2db   :  { %v791_v60 = vadd.f32 %v781_v37, %v769_v59  ;;  %913 = vmatprep.mubr.f32.mxu1 %v797_v55 }
 0x2dc   :  { %914 = vmatmul.mubr.f32.gmra.mrb[20].mxu1 %v796_v56  ;;  %v798_v5 = vmax.f32 %v790_v58, 0.0 }
 0x2dd   :  { %v799_v61 = vmax.f32 %v791_v60, 0.0 }
 0x2df   :  { %918 = vmatprep.mubr.f32.mxu1 %v799_v61 }
 0x2e0   :  { %919 = vmatmul.mubr.f32.gmra.mrb[22].mxu1 %v798_v5 }
 0x2e1   :  { %1083 = vmatprep.mubr.msk.f32.mxu1 %vm1572_vm0, %v1570_v0 }
 0x3a7   :  { %v1058_v1 = vpop.f32.mrb[16].mxu1 }
 0x3a8   :  { %v1059_v2 = vpop.f32.mrb[17].mxu1 }
 0x3a9   :  { %v1060_v3 = vadd.f32 %v1059_v2, %v1058_v1 }
 0x3ab   :  { %v1061_v13 = vpop.f32.mrb[18].mxu1  ;;  %v906_v15 = vadd.f32 %v1060_v3, %v1025_v12 }
 0x3ac   :  { %v1062_v14 = vpop.f32.mrb[19].mxu1 }
 0x3ad   :  { %v1063_v16 = vadd.f32 %v1062_v14, %v1061_v13  ;;  %v924_v19 = vmax.f32 %v906_v15, 0.0 }
 0x3af   :  { %v911_v17 = vadd.f32 %v1063_v16, %v1025_v12  ;;  %v1064_v0 = vpop.f32.mrb[20].mxu1 }
 0x3b0   :  { %v1065_v18 = vpop.f32.mrb[21].mxu1 }
 0x3b1   :  { %v925_v20 = vmax.f32 %v911_v17, 0.0  ;;  %v1066_v21 = vadd.f32 %v1065_v18, %v1064_v0 }
 0x3b3   :  { %v1343_v22 = vpack.c.bf16 %v925_v20, %v924_v19  ;;  %v1067_v24 = vpop.f32.mrb[22].mxu1  ;;  %v916_v25 = vadd.f32 %v1066_v21, %v1025_v12 }
 0x3b4   :  { %v1068_v23 = vpop.f32.mrb[23].mxu1 }
 0x3b5   :  { %v1069_v26 = vadd.f32 %v1068_v23, %v1067_v24  ;;  %1344 = vmatpush3.bf16.xpose.msra.mxu1 %v1343_v22  ;;  %v926_v4 = vmax.f32 %v916_v25, 0.0 }
 0x3b6   :  { %1345 = vmatprep.subr.bf16.mxu1 %v1571_v57 }
 0x3b7   :  { %v921_v27 = vadd.f32 %v1069_v26, %v1025_v12 }
 0x3b9   :  { %v927_v7 = vmax.f32 %v921_v27, 0.0 }
 0x3bb   :  { %v1346_v28 = vpack.c.bf16 %v927_v7, %v926_v4 }
 0x3bd   :  { %1347 = vmatpush3.bf16.xpose.msra.mxu1 %v1346_v28 }
 0x3c4   :  { %1084 = vmatmul.mubr.f32.vlgmr.msra.gmra.mrb[24].mxu1 %v928_v29 }
 0x497   :  { %v1001_v9 = vpop.f32.mrb[24].mxu1 }
 0x498   :  { %v1002_v30 = vadd.f32 %v1001_v9, %v933_v6  ;;  %v1085_v31 = vpop.f32.mrb[25].mxu1 }
 0x49a   :  { %1006 = vst.msk [vmem:[#allocation14] sm:$0xff] %vm1005_vm1, %v1002_v30 }
 0x49b   :  { %1538 = shalt.err (!%p1535_p4)
}
 0x49c   :  { %s1539_s11 = scalar_lea.hbm %s1849_s13, 128 }
 0x49d   :  { %p1540_p5 = scmp.ne.s32.totalorder %s1849_s13, %s1539_s11  ;;  %p1543_p6 = scmp.lt.u32.totalorder %s1539_s11, %s1849_s13 }
 0x49f   :  { %p1545_p7 = pnand %p1543_p6, %p1540_p5 }
 0x4a1   :  { %1548 = shalt.err (!%p1545_p7)
}
 0x4a2   :  { %1016 = dma.vmem_to_hbm [thread:$0]  %s1014_s16, 128, %s1849_s13, [#allocation4]  }
 0x4a3   :  { %1557 = dma.done.wait [#allocation4], 128  }
 0x4a4   :  { %1558 = vsyncadd [#allocation4], 4294967168 }
 0x4a5   :  { %1020 = vsyncpa [#allocation3], 1 }
 0x4a6   :  { %1021 = vsyncpa [#allocation6], 1 }
 0x4a7   :  { %1022 = vsyncpa [#allocation9], 1 }
 0x4a8   :  { %1023 = vsyncpa [#allocation12], 1 }
 0x4a9   :  { %1024 = vsyncpa [#allocation4], 1 }

</bundles_post_ra>
